<compile_context>
chip_gen: v7x
topology: tpu7x:2x2x1
jax: 0.10.0
libtpu: 0.0.40
codegen_flags: <defaults>
</compile_context>

<pallas_src>
import jax
import jax.numpy as jnp
from jax.experimental import pallas as pl
from jax.experimental.pallas import tpu as pltpu

LANE = 128  # TPU lane width: all kernel feature dims are padded to this


def _round_up(x, m):
    return (x + m - 1) // m * m


def _row_tile(m):
    """Fixed 256/512-row tiles when there is enough work, else one padded block."""
    if m >= 2048:
        return 512
    if m > 256:
        return 256
    return _round_up(m, 8)


_COMPILER_PARAMS = pltpu.CompilerParams(
    dimension_semantics=("parallel",),
    vmem_limit_bytes=32 * 1024 * 1024,
)


# ----------------------------- Pallas kernels ------------------------------ #

def _conv_pool_kernel(p_ref, w_ref, b_ref, o_ref):
    """Fused conv-as-matmul + bias + 2x2 maxpool + ReLU.

    p_ref: (4, bm, K)  four stride-2 im2col slabs, one per 2x2 pool tap
    w_ref: (K, 128)    flattened conv weight, output channels zero-padded to 128
    b_ref: (1, 128)    bias, zero-padded
    o_ref: (bm, 128)   pooled+ReLU'd rows in (b, oh, ow) order, channels on lanes
    """
    w = w_ref[...]
    y0 = jnp.dot(p_ref[0], w, preferred_element_type=jnp.float32)
    y1 = jnp.dot(p_ref[1], w, preferred_element_type=jnp.float32)
    y2 = jnp.dot(p_ref[2], w, preferred_element_type=jnp.float32)
    y3 = jnp.dot(p_ref[3], w, preferred_element_type=jnp.float32)
    # max over the 4 pool taps, then bias, then ReLU (== PyTorch pool(relu(conv+b)))
    y = jnp.maximum(jnp.maximum(y0, y1), jnp.maximum(y2, y3)) + b_ref[...]
    o_ref[...] = jnp.maximum(y, 0.0)


def _mlp_kernel(x_ref, w1_ref, b1_ref, w2_ref, b2_ref, w3_ref, b3_ref, o_ref):
    """Fused fc1 -> relu -> fc2 -> relu -> fc3 (all weights resident, 128-padded)."""
    h = jnp.dot(x_ref[...], w1_ref[...], preferred_element_type=jnp.float32) + b1_ref[...]
    h = jnp.maximum(h, 0.0)
    h = jnp.dot(h, w2_ref[...], preferred_element_type=jnp.float32) + b2_ref[...]
    h = jnp.maximum(h, 0.0)
    h = jnp.dot(h, w3_ref[...], preferred_element_type=jnp.float32) + b3_ref[...]
    o_ref[...] = h


# ------------------------------ JAX glue ----------------------------------- #

def _pooled_patches(x, kh, kw):
    """Stride-2 (pool-tap) im2col on an NHWC tensor.

    Returns (4, B*Hh*Wh, kh*kw*C); K ordered (di, dj, ci), matching the weight
    flattening jnp.transpose(w, (2, 3, 1, 0)).reshape(kh*kw*Cin, Cout).
    # TODO(synk): move this tap gather in-kernel (pl.ANY ref + strided reads) to cut
    # the ~kh*kw x HBM patch traffic at large batch.
    """
    B, H, W, C = x.shape
    Ho, Wo = H - kh + 1, W - kw + 1
    Hh, Wh = Ho // 2, Wo // 2
    slabs = []
    for pi in range(2):
        for pj in range(2):
            taps = []
            for di in range(kh):
                for dj in range(kw):
                    h0, w0 = pi + di, pj + dj
                    taps.append(
                        x[:, h0:h0 + 2 * Hh - 1:2, w0:w0 + 2 * Wh - 1:2, :])
            slab = jnp.concatenate(taps, axis=-1)          # (B, Hh, Wh, kh*kw*C)
            slabs.append(slab.reshape(B * Hh * Wh, kh * kw * C))
    return jnp.stack(slabs, axis=0), (B, Hh, Wh)


def conv_relu_pool(x_nhwc, w_pad, b_pad, *, cout, ksize):
    """Valid conv(ksize, stride 1) + bias + ReLU + MaxPool2d(2,2); NHWC in / NHWC out."""
    patches, (B, Hh, Wh) = _pooled_patches(x_nhwc, ksize, ksize)
    _, M, K = patches.shape
    bm = _row_tile(M)
    m_pad = _round_up(M, bm)
    if m_pad != M:
        patches = jnp.pad(patches, ((0, 0), (0, m_pad - M), (0, 0)))
    out = pl.pallas_call(
        _conv_pool_kernel,
        out_shape=jax.ShapeDtypeStruct((m_pad, LANE), jnp.float32),
        grid=(m_pad // bm,),
        in_specs=[
            pl.BlockSpec((4, bm, K), lambda i: (0, i, 0)),   # row-tiled patch slabs
            pl.BlockSpec((K, LANE), lambda i: (0, 0)),       # resident weight
            pl.BlockSpec((1, LANE), lambda i: (0, 0)),       # resident bias
        ],
        out_specs=pl.BlockSpec((bm, LANE), lambda i: (i, 0)),
        compiler_params=_COMPILER_PARAMS,
    )(patches, w_pad, b_pad)
    return out[:M, :cout].reshape(B, Hh, Wh, cout)


def mlp_head(x, w1, b1, w2, b2, w3, b3, *, n_out):
    """Fused fc1->relu->fc2->relu->fc3; x: (B, 256) f32; weights already (K, 128)."""
    B, K = x.shape
    bm = _row_tile(B)
    rows = _round_up(B, bm)
    if rows != B:
        x = jnp.pad(x, ((0, rows - B), (0, 0)))
    out = pl.pallas_call(
        _mlp_kernel,
        out_shape=jax.ShapeDtypeStruct((rows, LANE), jnp.float32),
        grid=(rows // bm,),
        in_specs=[
            pl.BlockSpec((bm, K), lambda i: (i, 0)),
            pl.BlockSpec((K, LANE), lambda i: (0, 0)),
            pl.BlockSpec((1, LANE), lambda i: (0, 0)),
            pl.BlockSpec((LANE, LANE), lambda i: (0, 0)),
            pl.BlockSpec((1, LANE), lambda i: (0, 0)),
            pl.BlockSpec((LANE, LANE), lambda i: (0, 0)),
            pl.BlockSpec((1, LANE), lambda i: (0, 0)),
        ],
        out_specs=pl.BlockSpec((bm, LANE), lambda i: (i, 0)),
        compiler_params=_COMPILER_PARAMS,
    )(x, w1, b1, w2, b2, w3, b3)
    return out[:B, :n_out]


# --------------------------- parameters & model ----------------------------- #

def init_params(key):
    """Deterministic PyTorch-style uniform(-1/sqrt(fan_in), 1/sqrt(fan_in)) init."""
    ks = jax.random.split(key, 10)

    def u(k, shape, fan_in):
        bound = 1.0 / jnp.sqrt(jnp.float32(fan_in))
        return jax.random.uniform(k, shape, jnp.float32, -bound, bound)

    return {
        "conv1_w": u(ks[0], (6, 1, 5, 5), 1 * 5 * 5),
        "conv1_b": u(ks[1], (6,), 1 * 5 * 5),
        "conv2_w": u(ks[2], (16, 6, 5, 5), 6 * 5 * 5),
        "conv2_b": u(ks[3], (16,), 6 * 5 * 5),
        "fc1_w": u(ks[4], (120, 16 * 4 * 4), 16 * 4 * 4),
        "fc1_b": u(ks[5], (120,), 16 * 4 * 4),
        "fc2_w": u(ks[6], (84, 120), 120),
        "fc2_b": u(ks[7], (84,), 120),
        "fc3_w": u(ks[8], (10, 84), 84),
        "fc3_b": u(ks[9], (10,), 84),
    }


def prepare_params(params):
    """One-time layout prep (outside jit): flatten conv weights to (K, Cout) matmul
    form (K order = (di, dj, ci)), transpose fc weights to (K, N), and zero-pad every
    feature dimension to the 128-lane width the kernels expect."""

    def pad_mat(m):
        k, n = m.shape
        return jnp.zeros((k, LANE), jnp.float32).at[:, :n].set(m)

    def pad_mat_rows(m, rows):
        k, n = m.shape
        return jnp.zeros((rows, LANE), jnp.float32).at[:k, :n].set(m)

    def pad_vec(v):
        return jnp.zeros((1, LANE), jnp.float32).at[0, :v.shape[0]].set(v)

    def conv_flat(w):  # (Cout, Cin, kh, kw) -> (kh*kw*Cin, Cout)
        cout, cin, kh, kw = w.shape
        return jnp.transpose(w, (2, 3, 1, 0)).reshape(kh * kw * cin, cout)

    return {
        "c1_w": pad_mat(conv_flat(params["conv1_w"])),                 # (25, 128)
        "c1_b": pad_vec(params["conv1_b"]),
        "c2_w": pad_mat(conv_flat(params["conv2_w"])),                 # (150, 128)
        "c2_b": pad_vec(params["conv2_b"]),
        "fc1_w": pad_mat(jnp.transpose(params["fc1_w"])),              # (256, 128)
        "fc1_b": pad_vec(params["fc1_b"]),
        "fc2_w": pad_mat_rows(jnp.transpose(params["fc2_w"]), LANE),   # (128, 128)
        "fc2_b": pad_vec(params["fc2_b"]),
        "fc3_w": pad_mat_rows(jnp.transpose(params["fc3_w"]), LANE),   # (128, 128)
        "fc3_b": pad_vec(params["fc3_b"]),
    }


def net_forward(prep, x):
    """x: (B, 1, 28, 28) NCHW float32 -> logits (B, 10)."""
    x = jnp.transpose(x, (0, 2, 3, 1))                                    # NHWC
    x = conv_relu_pool(x, prep["c1_w"], prep["c1_b"], cout=6, ksize=5)    # (B, 12, 12, 6)
    x = conv_relu_pool(x, prep["c2_w"], prep["c2_b"], cout=16, ksize=5)   # (B, 4, 4, 16)
    B = x.shape[0]
    # PyTorch `.view(-1, 16*4*4)` flattens NCHW -> tiny boundary transpose back.
    x = jnp.transpose(x, (0, 3, 1, 2)).reshape(B, 16 * 4 * 4)
    return mlp_head(x, prep["fc1_w"], prep["fc1_b"], prep["fc2_w"], prep["fc2_b"],
                    prep["fc3_w"], prep["fc3_b"], n_out=10)


# ----------------------- pure-JAX reference (for checking) ------------------ #

def reference_forward(params, x):
    def conv(x, w, b):
        y = jax.lax.conv_general_dilated(
            x, w, window_strides=(1, 1), padding="VALID",
            dimension_numbers=("NCHW", "OIHW", "NCHW"))
        return y + b.reshape(1, -1, 1, 1)

    def pool(x):
        return jax.lax.reduce_window(x, -jnp.inf, jax.lax.max,
                                     (1, 1, 2, 2), (1, 1, 2, 2), "VALID")

    x = pool(jax.nn.relu(conv(x, params["conv1_w"], params["conv1_b"])))
    x = pool(jax.nn.relu(conv(x, params["conv2_w"], params["conv2_b"])))
    B = x.shape[0]
    x = x.reshape(B, 16 * 4 * 4)
    x = jax.nn.relu(x @ params["fc1_w"].T + params["fc1_b"])
    x = jax.nn.relu(x @ params["fc2_w"].T + params["fc2_b"])
    return x @ params["fc3_w"].T + params["fc3_b"]


if __name__ == "__main__":
    key = jax.random.PRNGKey(0)
    pkey, xkey = jax.random.split(key)
    params = init_params(pkey)
    prep = prepare_params(params)          # one-time weight layout / padding prep
    x = jax.random.normal(xkey, (2, 1, 28, 28), jnp.float32)

    out = jax.block_until_ready(jax.jit(net_forward)(prep, x))
    assert out.shape == (2, 10) and out.dtype == jnp.float32

    ref = jax.block_until_ready(jax.jit(reference_forward)(params, x))
    max_err = float(jnp.max(jnp.abs(out - ref)))
    assert max_err < 5e-2, f"mismatch vs reference: max_err={max_err}"
    print("KERNEL_OK")
</pallas_src>

<mosaic_0001>
module attributes {stable_mosaic.version = 11 : i64} {
  func.func @_conv_pool_kernel(%arg0: i32, %arg1: memref<4x256x25xf32, #tpu.memory_space<vmem>>, %arg2: memref<25x128xf32, #tpu.memory_space<vmem>>, %arg3: memref<1x128xf32, #tpu.memory_space<vmem>>, %arg4: memref<256x128xf32, #tpu.memory_space<vmem>>) attributes {dimension_semantics = [#tpu.dimension_semantics<parallel>], iteration_bounds = array<i64: 2>, scalar_prefetch = 0 : i64, scratch_operands = 0 : i64, tpu.core_type = #tpu.core_type<tc>, window_params = [{transform_indices = @transform_0, window_bounds = array<i64: 4, 256, 25>}, {pipeline_mode = #tpu.pipeline_mode<synchronous>, transform_indices = @transform_1, window_bounds = array<i64: 25, 128>}, {pipeline_mode = #tpu.pipeline_mode<synchronous>, transform_indices = @transform_2, window_bounds = array<i64: 1, 128>}, {transform_indices = @transform_3, window_bounds = array<i64: 256, 128>}]} {
    %c0 = arith.constant 0 : index
    %c0_0 = arith.constant 0 : index
    %0 = vector.load %arg2[%c0, %c0_0] : memref<25x128xf32, #tpu.memory_space<vmem>>, vector<25x128xf32>
    %c0_1 = arith.constant 0 : index
    %c0_2 = arith.constant 0 : index
    %c0_3 = arith.constant 0 : index
    %1 = vector.load %arg1[%c0_1, %c0_2, %c0_3] : memref<4x256x25xf32, #tpu.memory_space<vmem>>, vector<1x256x25xf32>
    %2 = vector.shape_cast %1 : vector<1x256x25xf32> to vector<256x25xf32>
    %cst = arith.constant dense<0.000000e+00> : vector<256x128xf32>
    %3 = tpu.matmul %2, %0, %cst {dimension_numbers = #tpu.dot_dimension_numbers<[1], [0], [0], [1], [0, 0, 1, 1], [], []>} : vector<256x25xf32>, vector<25x128xf32>, vector<256x128xf32> -> vector<256x128xf32>
    %c1 = arith.constant 1 : index
    %c0_4 = arith.constant 0 : index
    %c0_5 = arith.constant 0 : index
    %4 = vector.load %arg1[%c1, %c0_4, %c0_5] : memref<4x256x25xf32, #tpu.memory_space<vmem>>, vector<1x256x25xf32>
    %5 = vector.shape_cast %4 : vector<1x256x25xf32> to vector<256x25xf32>
    %cst_6 = arith.constant dense<0.000000e+00> : vector<256x128xf32>
    %6 = tpu.matmul %5, %0, %cst_6 {dimension_numbers = #tpu.dot_dimension_numbers<[1], [0], [0], [1], [0, 0, 1, 1], [], []>} : vector<256x25xf32>, vector<25x128xf32>, vector<256x128xf32> -> vector<256x128xf32>
    %c2 = arith.constant 2 : index
    %c0_7 = arith.constant 0 : index
    %c0_8 = arith.constant 0 : index
    %7 = vector.load %arg1[%c2, %c0_7, %c0_8] : memref<4x256x25xf32, #tpu.memory_space<vmem>>, vector<1x256x25xf32>
    %8 = vector.shape_cast %7 : vector<1x256x25xf32> to vector<256x25xf32>
    %cst_9 = arith.constant dense<0.000000e+00> : vector<256x128xf32>
    %9 = tpu.matmul %8, %0, %cst_9 {dimension_numbers = #tpu.dot_dimension_numbers<[1], [0], [0], [1], [0, 0, 1, 1], [], []>} : vector<256x25xf32>, vector<25x128xf32>, vector<256x128xf32> -> vector<256x128xf32>
    %c3 = arith.constant 3 : index
    %c0_10 = arith.constant 0 : index
    %c0_11 = arith.constant 0 : index
    %10 = vector.load %arg1[%c3, %c0_10, %c0_11] : memref<4x256x25xf32, #tpu.memory_space<vmem>>, vector<1x256x25xf32>
    %11 = vector.shape_cast %10 : vector<1x256x25xf32> to vector<256x25xf32>
    %cst_12 = arith.constant dense<0.000000e+00> : vector<256x128xf32>
    %12 = tpu.matmul %11, %0, %cst_12 {dimension_numbers = #tpu.dot_dimension_numbers<[1], [0], [0], [1], [0, 0, 1, 1], [], []>} : vector<256x25xf32>, vector<25x128xf32>, vector<256x128xf32> -> vector<256x128xf32>
    %13 = arith.maximumf %3, %6 : vector<256x128xf32>
    %14 = arith.maximumf %9, %12 : vector<256x128xf32>
    %15 = arith.maximumf %13, %14 : vector<256x128xf32>
    %c0_13 = arith.constant 0 : index
    %c0_14 = arith.constant 0 : index
    %16 = vector.load %arg3[%c0_13, %c0_14] : memref<1x128xf32, #tpu.memory_space<vmem>>, vector<1x128xf32>
    %17 = vector.broadcast %16 : vector<1x128xf32> to vector<256x128xf32>
    %18 = arith.addf %15, %17 : vector<256x128xf32>
    %cst_15 = arith.constant 0.000000e+00 : f32
    %19 = vector.broadcast %cst_15 : f32 to vector<256x128xf32>
    %20 = arith.maximumf %18, %19 : vector<256x128xf32>
    %c0_16 = arith.constant 0 : index
    %c0_17 = arith.constant 0 : index
    %21 = vector.load %arg4[%c0_16, %c0_17] : memref<256x128xf32, #tpu.memory_space<vmem>>, vector<256x128xf32>
    tpu.vector_store %arg4[%c0_16, %c0_17], %20 {strides = array<i32>} : memref<256x128xf32, #tpu.memory_space<vmem>>, vector<256x128xf32>,
    return
  }
  func.func @transform_0(%arg0: i32) -> (i32, i32, i32) {
    %c0_i32 = arith.constant 0 : i32
    %c0_i32_0 = arith.constant 0 : i32
    %c0_i32_1 = arith.constant 0 : i32
    return %c0_i32, %arg0, %c0_i32_0 : i32, i32, i32
  }
  func.func @transform_1(%arg0: i32) -> (i32, i32) {
    %c0_i32 = arith.constant 0 : i32
    %c0_i32_0 = arith.constant 0 : i32
    %c0_i32_1 = arith.constant 0 : i32
    return %c0_i32, %c0_i32_0 : i32, i32
  }
  func.func @transform_2(%arg0: i32) -> (i32, i32) {
    %c0_i32 = arith.constant 0 : i32
    %c0_i32_0 = arith.constant 0 : i32
    %c0_i32_1 = arith.constant 0 : i32
    return %c0_i32, %c0_i32_0 : i32, i32
  }
  func.func @transform_3(%arg0: i32) -> (i32, i32) {
    %c0_i32 = arith.constant 0 : i32
    %c0_i32_0 = arith.constant 0 : i32
    return %arg0, %c0_i32 : i32, i32
  }
}

module attributes {stable_mosaic.version = 11 : i64} {
  func.func @_conv_pool_kernel(%arg0: i32, %arg1: memref<4x32x150xf32, #tpu.memory_space<vmem>>, %arg2: memref<150x128xf32, #tpu.memory_space<vmem>>, %arg3: memref<1x128xf32, #tpu.memory_space<vmem>>, %arg4: memref<32x128xf32, #tpu.memory_space<vmem>>) attributes {dimension_semantics = [#tpu.dimension_semantics<parallel>], iteration_bounds = array<i64: 1>, scalar_prefetch = 0 : i64, scratch_operands = 0 : i64, tpu.core_type = #tpu.core_type<tc>, window_params = [{transform_indices = @transform_0, window_bounds = array<i64: 4, 32, 150>}, {pipeline_mode = #tpu.pipeline_mode<synchronous>, transform_indices = @transform_1, window_bounds = array<i64: 150, 128>}, {pipeline_mode = #tpu.pipeline_mode<synchronous>, transform_indices = @transform_2, window_bounds = array<i64: 1, 128>}, {transform_indices = @transform_3, window_bounds = array<i64: 32, 128>}]} {
    %c0 = arith.constant 0 : index
    %c0_0 = arith.constant 0 : index
    %0 = vector.load %arg2[%c0, %c0_0] : memref<150x128xf32, #tpu.memory_space<vmem>>, vector<150x128xf32>
    %c0_1 = arith.constant 0 : index
    %c0_2 = arith.constant 0 : index
    %c0_3 = arith.constant 0 : index
    %1 = vector.load %arg1[%c0_1, %c0_2, %c0_3] : memref<4x32x150xf32, #tpu.memory_space<vmem>>, vector<1x32x150xf32>
    %2 = vector.shape_cast %1 : vector<1x32x150xf32> to vector<32x150xf32>
    %cst = arith.constant dense<0.000000e+00> : vector<32x128xf32>
    %3 = tpu.matmul %2, %0, %cst {dimension_numbers = #tpu.dot_dimension_numbers<[1], [0], [0], [1], [0, 0, 1, 1], [], []>} : vector<32x150xf32>, vector<150x128xf32>, vector<32x128xf32> -> vector<32x128xf32>
    %c1 = arith.constant 1 : index
    %c0_4 = arith.constant 0 : index
    %c0_5 = arith.constant 0 : index
    %4 = vector.load %arg1[%c1, %c0_4, %c0_5] : memref<4x32x150xf32, #tpu.memory_space<vmem>>, vector<1x32x150xf32>
    %5 = vector.shape_cast %4 : vector<1x32x150xf32> to vector<32x150xf32>
    %cst_6 = arith.constant dense<0.000000e+00> : vector<32x128xf32>
    %6 = tpu.matmul %5, %0, %cst_6 {dimension_numbers = #tpu.dot_dimension_numbers<[1], [0], [0], [1], [0, 0, 1, 1], [], []>} : vector<32x150xf32>, vector<150x128xf32>, vector<32x128xf32> -> vector<32x128xf32>
    %c2 = arith.constant 2 : index
    %c0_7 = arith.constant 0 : index
    %c0_8 = arith.constant 0 : index
    %7 = vector.load %arg1[%c2, %c0_7, %c0_8] : memref<4x32x150xf32, #tpu.memory_space<vmem>>, vector<1x32x150xf32>
    %8 = vector.shape_cast %7 : vector<1x32x150xf32> to vector<32x150xf32>
    %cst_9 = arith.constant dense<0.000000e+00> : vector<32x128xf32>
    %9 = tpu.matmul %8, %0, %cst_9 {dimension_numbers = #tpu.dot_dimension_numbers<[1], [0], [0], [1], [0, 0, 1, 1], [], []>} : vector<32x150xf32>, vector<150x128xf32>, vector<32x128xf32> -> vector<32x128xf32>
    %c3 = arith.constant 3 : index
    %c0_10 = arith.constant 0 : index
    %c0_11 = arith.constant 0 : index
    %10 = vector.load %arg1[%c3, %c0_10, %c0_11] : memref<4x32x150xf32, #tpu.memory_space<vmem>>, vector<1x32x150xf32>
    %11 = vector.shape_cast %10 : vector<1x32x150xf32> to vector<32x150xf32>
    %cst_12 = arith.constant dense<0.000000e+00> : vector<32x128xf32>
    %12 = tpu.matmul %11, %0, %cst_12 {dimension_numbers = #tpu.dot_dimension_numbers<[1], [0], [0], [1], [0, 0, 1, 1], [], []>} : vector<32x150xf32>, vector<150x128xf32>, vector<32x128xf32> -> vector<32x128xf32>
    %13 = arith.maximumf %3, %6 : vector<32x128xf32>
    %14 = arith.maximumf %9, %12 : vector<32x128xf32>
    %15 = arith.maximumf %13, %14 : vector<32x128xf32>
    %c0_13 = arith.constant 0 : index
    %c0_14 = arith.constant 0 : index
    %16 = vector.load %arg3[%c0_13, %c0_14] : memref<1x128xf32, #tpu.memory_space<vmem>>, vector<1x128xf32>
    %17 = vector.broadcast %16 : vector<1x128xf32> to vector<32x128xf32>
    %18 = arith.addf %15, %17 : vector<32x128xf32>
    %cst_15 = arith.constant 0.000000e+00 : f32
    %19 = vector.broadcast %cst_15 : f32 to vector<32x128xf32>
    %20 = arith.maximumf %18, %19 : vector<32x128xf32>
    %c0_16 = arith.constant 0 : index
    %c0_17 = arith.constant 0 : index
    %21 = vector.load %arg4[%c0_16, %c0_17] : memref<32x128xf32, #tpu.memory_space<vmem>>, vector<32x128xf32>
    tpu.vector_store %arg4[%c0_16, %c0_17], %20 {strides = array<i32>} : memref<32x128xf32, #tpu.memory_space<vmem>>, vector<32x128xf32>,
    return
  }
  func.func @transform_0(%arg0: i32) -> (i32, i32, i32) {
    %c0_i32 = arith.constant 0 : i32
    %c0_i32_0 = arith.constant 0 : i32
    %c0_i32_1 = arith.constant 0 : i32
    return %c0_i32, %arg0, %c0_i32_0 : i32, i32, i32
  }
  func.func @transform_1(%arg0: i32) -> (i32, i32) {
    %c0_i32 = arith.constant 0 : i32
    %c0_i32_0 = arith.constant 0 : i32
    %c0_i32_1 = arith.constant 0 : i32
    return %c0_i32, %c0_i32_0 : i32, i32
  }
  func.func @transform_2(%arg0: i32) -> (i32, i32) {
    %c0_i32 = arith.constant 0 : i32
    %c0_i32_0 = arith.constant 0 : i32
    %c0_i32_1 = arith.constant 0 : i32
    return %c0_i32, %c0_i32_0 : i32, i32
  }
  func.func @transform_3(%arg0: i32) -> (i32, i32) {
    %c0_i32 = arith.constant 0 : i32
    %c0_i32_0 = arith.constant 0 : i32
    return %arg0, %c0_i32 : i32, i32
  }
}

module attributes {stable_mosaic.version = 11 : i64} {
  func.func @_mlp_kernel(%arg0: i32, %arg1: memref<8x256xf32, #tpu.memory_space<vmem>>, %arg2: memref<256x128xf32, #tpu.memory_space<vmem>>, %arg3: memref<1x128xf32, #tpu.memory_space<vmem>>, %arg4: memref<128x128xf32, #tpu.memory_space<vmem>>, %arg5: memref<1x128xf32, #tpu.memory_space<vmem>>, %arg6: memref<128x128xf32, #tpu.memory_space<vmem>>, %arg7: memref<1x128xf32, #tpu.memory_space<vmem>>, %arg8: memref<8x128xf32, #tpu.memory_space<vmem>>) attributes {dimension_semantics = [#tpu.dimension_semantics<parallel>], iteration_bounds = array<i64: 1>, scalar_prefetch = 0 : i64, scratch_operands = 0 : i64, tpu.core_type = #tpu.core_type<tc>, window_params = [{transform_indices = @transform_0, window_bounds = array<i64: 8, 256>}, {pipeline_mode = #tpu.pipeline_mode<synchronous>, transform_indices = @transform_1, window_bounds = array<i64: 256, 128>}, {pipeline_mode = #tpu.pipeline_mode<synchronous>, transform_indices = @transform_2, window_bounds = array<i64: 1, 128>}, {pipeline_mode = #tpu.pipeline_mode<synchronous>, transform_indices = @transform_3, window_bounds = array<i64: 128, 128>}, {pipeline_mode = #tpu.pipeline_mode<synchronous>, transform_indices = @transform_4, window_bounds = array<i64: 1, 128>}, {pipeline_mode = #tpu.pipeline_mode<synchronous>, transform_indices = @transform_5, window_bounds = array<i64: 128, 128>}, {pipeline_mode = #tpu.pipeline_mode<synchronous>, transform_indices = @transform_6, window_bounds = array<i64: 1, 128>}, {transform_indices = @transform_7, window_bounds = array<i64: 8, 128>}]} {
    %c0 = arith.constant 0 : index
    %c0_0 = arith.constant 0 : index
    %0 = vector.load %arg1[%c0, %c0_0] : memref<8x256xf32, #tpu.memory_space<vmem>>, vector<8x256xf32>
    %c0_1 = arith.constant 0 : index
    %c0_2 = arith.constant 0 : index
    %1 = vector.load %arg2[%c0_1, %c0_2] : memref<256x128xf32, #tpu.memory_space<vmem>>, vector<256x128xf32>
    %cst = arith.constant dense<0.000000e+00> : vector<8x128xf32>
    %2 = tpu.matmul %0, %1, %cst {dimension_numbers = #tpu.dot_dimension_numbers<[1], [0], [0], [1], [0, 0, 1, 1], [], []>} : vector<8x256xf32>, vector<256x128xf32>, vector<8x128xf32> -> vector<8x128xf32>
    %c0_3 = arith.constant 0 : index
    %c0_4 = arith.constant 0 : index
    %3 = vector.load %arg3[%c0_3, %c0_4] : memref<1x128xf32, #tpu.memory_space<vmem>>, vector<1x128xf32>
    %4 = vector.broadcast %3 : vector<1x128xf32> to vector<8x128xf32>
    %5 = arith.addf %2, %4 : vector<8x128xf32>
    %cst_5 = arith.constant 0.000000e+00 : f32
    %6 = vector.broadcast %cst_5 : f32 to vector<8x128xf32>
    %7 = arith.maximumf %5, %6 : vector<8x128xf32>
    %c0_6 = arith.constant 0 : index
    %c0_7 = arith.constant 0 : index
    %8 = vector.load %arg4[%c0_6, %c0_7] : memref<128x128xf32, #tpu.memory_space<vmem>>, vector<128x128xf32>
    %cst_8 = arith.constant dense<0.000000e+00> : vector<8x128xf32>
    %9 = tpu.matmul %7, %8, %cst_8 {dimension_numbers = #tpu.dot_dimension_numbers<[1], [0], [0], [1], [0, 0, 1, 1], [], []>} : vector<8x128xf32>, vector<128x128xf32>, vector<8x128xf32> -> vector<8x128xf32>
    %c0_9 = arith.constant 0 : index
    %c0_10 = arith.constant 0 : index
    %10 = vector.load %arg5[%c0_9, %c0_10] : memref<1x128xf32, #tpu.memory_space<vmem>>, vector<1x128xf32>
    %11 = vector.broadcast %10 : vector<1x128xf32> to vector<8x128xf32>
    %12 = arith.addf %9, %11 : vector<8x128xf32>
    %cst_11 = arith.constant 0.000000e+00 : f32
    %13 = vector.broadcast %cst_11 : f32 to vector<8x128xf32>
    %14 = arith.maximumf %12, %13 : vector<8x128xf32>
    %c0_12 = arith.constant 0 : index
    %c0_13 = arith.constant 0 : index
    %15 = vector.load %arg6[%c0_12, %c0_13] : memref<128x128xf32, #tpu.memory_space<vmem>>, vector<128x128xf32>
    %cst_14 = arith.constant dense<0.000000e+00> : vector<8x128xf32>
    %16 = tpu.matmul %14, %15, %cst_14 {dimension_numbers = #tpu.dot_dimension_numbers<[1], [0], [0], [1], [0, 0, 1, 1], [], []>} : vector<8x128xf32>, vector<128x128xf32>, vector<8x128xf32> -> vector<8x128xf32>
    %c0_15 = arith.constant 0 : index
    %c0_16 = arith.constant 0 : index
    %17 = vector.load %arg7[%c0_15, %c0_16] : memref<1x128xf32, #tpu.memory_space<vmem>>, vector<1x128xf32>
    %18 = vector.broadcast %17 : vector<1x128xf32> to vector<8x128xf32>
    %19 = arith.addf %16, %18 : vector<8x128xf32>
    %c0_17 = arith.constant 0 : index
    %c0_18 = arith.constant 0 : index
    %20 = vector.load %arg8[%c0_17, %c0_18] : memref<8x128xf32, #tpu.memory_space<vmem>>, vector<8x128xf32>
    tpu.vector_store %arg8[%c0_17, %c0_18], %19 {strides = array<i32>} : memref<8x128xf32, #tpu.memory_space<vmem>>, vector<8x128xf32>,
    return
  }
  func.func @transform_0(%arg0: i32) -> (i32, i32) {
    %c0_i32 = arith.constant 0 : i32
    %c0_i32_0 = arith.constant 0 : i32
    return %arg0, %c0_i32 : i32, i32
  }
  func.func @transform_1(%arg0: i32) -> (i32, i32) {
    %c0_i32 = arith.constant 0 : i32
    %c0_i32_0 = arith.constant 0 : i32
    %c0_i32_1 = arith.constant 0 : i32
    return %c0_i32, %c0_i32_0 : i32, i32
  }
  func.func @transform_2(%arg0: i32) -> (i32, i32) {
    %c0_i32 = arith.constant 0 : i32
    %c0_i32_0 = arith.constant 0 : i32
    %c0_i32_1 = arith.constant 0 : i32
    return %c0_i32, %c0_i32_0 : i32, i32
  }
  func.func @transform_3(%arg0: i32) -> (i32, i32) {
    %c0_i32 = arith.constant 0 : i32
    %c0_i32_0 = arith.constant 0 : i32
    %c0_i32_1 = arith.constant 0 : i32
    return %c0_i32, %c0_i32_0 : i32, i32
  }
  func.func @transform_4(%arg0: i32) -> (i32, i32) {
    %c0_i32 = arith.constant 0 : i32
    %c0_i32_0 = arith.constant 0 : i32
    %c0_i32_1 = arith.constant 0 : i32
    return %c0_i32, %c0_i32_0 : i32, i32
  }
  func.func @transform_5(%arg0: i32) -> (i32, i32) {
    %c0_i32 = arith.constant 0 : i32
    %c0_i32_0 = arith.constant 0 : i32
    %c0_i32_1 = arith.constant 0 : i32
    return %c0_i32, %c0_i32_0 : i32, i32
  }
  func.func @transform_6(%arg0: i32) -> (i32, i32) {
    %c0_i32 = arith.constant 0 : i32
    %c0_i32_0 = arith.constant 0 : i32
    %c0_i32_1 = arith.constant 0 : i32
    return %c0_i32, %c0_i32_0 : i32, i32
  }
  func.func @transform_7(%arg0: i32) -> (i32, i32) {
    %c0_i32 = arith.constant 0 : i32
    %c0_i32_0 = arith.constant 0 : i32
    return %arg0, %c0_i32 : i32, i32
  }
}

</mosaic_0001>

<bundles_post_ra>
// kernel: net_forward.3
= control target key start
LH: loop header
LB: loop body
LE: loop exit
PB: predicated region body
PF: predicated region fallthrough
CT: control target
= control target key end

     0   :  { %s3122_s12 = smov 0   ;;  %s3124_s13 = smov 0   ;;  %s4083_s0 = inlined_call_operand.vmem [shape: f32[4,512,25], index: 0, kind: input, shape index: {}]   ;;  %s4084_s1 = inlined_call_operand.vmem [shape: f32[25,128], index: 1, kind: input, shape index: {}]   ;;  %s4085_s2 = inlined_call_operand.vmem [shape: f32[1,128], index: 2, kind: input, shape index: {}]   ;;  %s4086_s3 = inlined_call_operand.vmem [shape: f32[512,128], index: 3, kind: output, shape index: {}]  }
   0x1   :  { %s3126_s14 = smov 0  }
   0x2 LB: > { %s2401_s15 = sadd.s32 4294967295, %s3099_s14   ;;  %s3139_s16 = sadd.s32 1, %s3099_s14   ;;  %s3099_s14 = sphi %s3126_s14, %s4168_s14   ;;  %s3095_s13 = sphi %s3124_s13, %s4167_s13   ;;  %s3091_s12 = sphi %s3122_s12, %s4166_s12  }
   0x3   : > { %s17_s17 = ssub.s32 %s3099_s14, %s3139_s16  ;;  %s20_s18 = sadd.s32 1, %s3095_s13 }
   0x4   : > { %p18_p0 = scmp.eq.s32.totalorder %s17_s17, 0  ;;  %p27_p1 = scmp.ne.s32.totalorder %s3095_s13, %s3091_s12 }
   0x5   : > { %p28_p2 = scmp.eq.s32.totalorder %s3099_s14, 0  ;;  %p2404_p4 = scmp.ge.s32.totalorder %s3099_s14, 2 }
   0x6   : > { %s3148_s19 = scalar_select %p18_p0, %s3095_s13, %s20_s18  }
   0x7   : > { %p29_p3 = por %p28_p2, %p27_p1  ;;  %127 = sbr.rel (%p2404_p4) target bundleno = 82 (0x52), region = 24 }
   0xe   : > { %130 = sbr.rel (!%p29_p3) target bundleno = 82 (0x52), region = 28  ;;  %s132_s20 = sand.u32 (%p29_p3), 1, %s3095_s13  }
   0xf   : > { %s2643_s21 = sshll.u32 (%p29_p3), %s3099_s14, 8  ;;  %s2405_s22 = sshll.u32 (%p29_p3), %s132_s20, 10 }
  0x10   : > { %s3156_s25 = scalar_lea.vmem (%p29_p3), %s4083_s0, %s2643_s21  ;;  %s3161_s26 = scalar_lea.vmem (%p29_p3), [#allocation2], %s2405_s22 }
  0x11   : > { %v419_v0 = vld [vmem:[%s3156_s25] sm:$0xff] (%p29_p3)  ;;  %v421_v1 = vld [vmem:[%s3156_s25 + $0x8] sm:$0xff] (%p29_p3)  ;;  %v423_v2 = vld [vmem:[%s3156_s25 + $0x10] sm:$0xff] (%p29_p3) }
  0x12   : > { %420 = vst [vmem:[%s3161_s26] sm:$0xff] (%p29_p3), %v419_v0  ;;  %422 = vst [vmem:[%s3161_s26 + $0x8] sm:$0xff] (%p29_p3), %v421_v1  ;;  %v425_v3 = vld [vmem:[%s3156_s25 + $0x18] sm:$0xff] (%p29_p3)  ;;  %v427_v4 = vld [vmem:[%s3156_s25 + $0x20] sm:$0xff] (%p29_p3) }
  0x13   : > { %424 = vst [vmem:[%s3161_s26 + $0x10] sm:$0xff] (%p29_p3), %v423_v2  ;;  %v429_v5 = vld [vmem:[%s3156_s25 + $0x28] sm:$0xff] (%p29_p3)  ;;  %426 = vst [vmem:[%s3161_s26 + $0x18] sm:$0xff] (%p29_p3), %v425_v3  ;;  %v431_v6 = vld [vmem:[%s3156_s25 + $0x30] sm:$0xff] (%p29_p3) }
  0x14   : > { %428 = vst [vmem:[%s3161_s26 + $0x20] sm:$0xff] (%p29_p3), %v427_v4  ;;  %430 = vst [vmem:[%s3161_s26 + $0x28] sm:$0xff] (%p29_p3), %v429_v5  ;;  %v433_v7 = vld [vmem:[%s3156_s25 + $0x38] sm:$0xff] (%p29_p3)  ;;  %v435_v8 = vld [vmem:[%s3156_s25 + $0x40] sm:$0xff] (%p29_p3) }
  0x15   : > { %432 = vst [vmem:[%s3161_s26 + $0x30] sm:$0xff] %v431_v6  ;;  %434 = vst [vmem:[%s3161_s26 + $0x38] sm:$0xff] %v433_v7  ;;  %v437_v9 = vld [vmem:[%s3156_s25 + $0x48] sm:$0xff]  ;;  %v439_v10 = vld [vmem:[%s3156_s25 + $0x50] sm:$0xff] }
  0x16   : > { %436 = vst [vmem:[%s3161_s26 + $0x40] sm:$0xff] %v435_v8  ;;  %v441_v11 = vld [vmem:[%s3156_s25 + $0x58] sm:$0xff]  ;;  %438 = vst [vmem:[%s3161_s26 + $0x48] sm:$0xff] %v437_v9  ;;  %v443_v12 = vld [vmem:[%s3156_s25 + $0x60] sm:$0xff] }
  0x17   : > { %440 = vst [vmem:[%s3161_s26 + $0x50] sm:$0xff] %v439_v10  ;;  %442 = vst [vmem:[%s3161_s26 + $0x58] sm:$0xff] %v441_v11  ;;  %v445_v13 = vld [vmem:[%s3156_s25 + $0x68] sm:$0xff]  ;;  %v447_v14 = vld [vmem:[%s3156_s25 + $0x70] sm:$0xff] }
  0x18   : > { %444 = vst [vmem:[%s3161_s26 + $0x60] sm:$0xff] %v443_v12  ;;  %446 = vst [vmem:[%s3161_s26 + $0x68] sm:$0xff] %v445_v13  ;;  %v449_v15 = vld [vmem:[%s3156_s25 + $0x78] sm:$0xff]  ;;  %v451_v16 = vld [vmem:[%s3156_s25 + $0x80] sm:$0xff] }
  0x19   : > { %448 = vst [vmem:[%s3161_s26 + $0x70] sm:$0xff] %v447_v14  ;;  %v453_v17 = vld [vmem:[%s3156_s25 + $0x88] sm:$0xff]  ;;  %450 = vst [vmem:[%s3161_s26 + $0x78] sm:$0xff] %v449_v15  ;;  %v455_v18 = vld [vmem:[%s3156_s25 + $0x90] sm:$0xff] }
  0x1a   : > { %452 = vst [vmem:[%s3161_s26 + $0x80] sm:$0xff] %v451_v16  ;;  %454 = vst [vmem:[%s3161_s26 + $0x88] sm:$0xff] %v453_v17  ;;  %v457_v19 = vld [vmem:[%s3156_s25 + $0x98] sm:$0xff]  ;;  %v459_v20 = vld [vmem:[%s3156_s25 + $0xa0] sm:$0xff] }
  0x1b   : > { %456 = vst [vmem:[%s3161_s26 + $0x90] sm:$0xff] %v455_v18  ;;  %458 = vst [vmem:[%s3161_s26 + $0x98] sm:$0xff] %v457_v19  ;;  %v461_v21 = vld [vmem:[%s3156_s25 + $0xa8] sm:$0xff]  ;;  %v463_v22 = vld [vmem:[%s3156_s25 + $0xb0] sm:$0xff] }
  0x1c   : > { %460 = vst [vmem:[%s3161_s26 + $0xa0] sm:$0xff] %v459_v20  ;;  %v465_v23 = vld [vmem:[%s3156_s25 + $0xb8] sm:$0xff]  ;;  %462 = vst [vmem:[%s3161_s26 + $0xa8] sm:$0xff] %v461_v21  ;;  %v467_v24 = vld [vmem:[%s3156_s25 + $0xc0] sm:$0xff] }
  0x1d   : > { %464 = vst [vmem:[%s3161_s26 + $0xb0] sm:$0xff] %v463_v22  ;;  %466 = vst [vmem:[%s3161_s26 + $0xb8] sm:$0xff] %v465_v23  ;;  %v469_v25 = vld [vmem:[%s3156_s25 + $0xc8] sm:$0xff]  ;;  %v471_v26 = vld [vmem:[%s3156_s25 + $0xd0] sm:$0xff] }
  0x1e   : > { %468 = vst [vmem:[%s3161_s26 + $0xc0] sm:$0xff] %v467_v24  ;;  %470 = vst [vmem:[%s3161_s26 + $0xc8] sm:$0xff] %v469_v25  ;;  %v473_v27 = vld [vmem:[%s3156_s25 + $0xd8] sm:$0xff]  ;;  %v475_v28 = vld [vmem:[%s3156_s25 + $0xe0] sm:$0xff] }
  0x1f   : > { %472 = vst [vmem:[%s3161_s26 + $0xd0] sm:$0xff] %v471_v26  ;;  %v477_v29 = vld [vmem:[%s3156_s25 + $0xe8] sm:$0xff]  ;;  %474 = vst [vmem:[%s3161_s26 + $0xd8] sm:$0xff] %v473_v27  ;;  %v479_v30 = vld [vmem:[%s3156_s25 + $0xf0] sm:$0xff] }
  0x20   : > { %476 = vst [vmem:[%s3161_s26 + $0xe0] sm:$0xff] %v475_v28  ;;  %478 = vst [vmem:[%s3161_s26 + $0xe8] sm:$0xff] %v477_v29  ;;  %v481_v31 = vld [vmem:[%s3156_s25 + $0xf8] sm:$0xff]  ;;  %v483_v32 = vld [vmem:[%s3156_s25 + $0x200] sm:$0xff] }
  0x21   : > { %480 = vst [vmem:[%s3161_s26 + $0xf0] sm:$0xff] %v479_v30  ;;  %482 = vst [vmem:[%s3161_s26 + $0xf8] sm:$0xff] %v481_v31  ;;  %v485_v33 = vld [vmem:[%s3156_s25 + $0x208] sm:$0xff]  ;;  %v487_v34 = vld [vmem:[%s3156_s25 + $0x210] sm:$0xff] }
  0x22   : > { %484 = vst [vmem:[%s3161_s26 + $0x100] sm:$0xff] %v483_v32  ;;  %v489_v35 = vld [vmem:[%s3156_s25 + $0x218] sm:$0xff]  ;;  %486 = vst [vmem:[%s3161_s26 + $0x108] sm:$0xff] %v485_v33  ;;  %v491_v36 = vld [vmem:[%s3156_s25 + $0x220] sm:$0xff] }
  0x23   : > { %488 = vst [vmem:[%s3161_s26 + $0x110] sm:$0xff] %v487_v34  ;;  %490 = vst [vmem:[%s3161_s26 + $0x118] sm:$0xff] %v489_v35  ;;  %v493_v37 = vld [vmem:[%s3156_s25 + $0x228] sm:$0xff]  ;;  %v495_v38 = vld [vmem:[%s3156_s25 + $0x230] sm:$0xff] }
  0x24   : > { %492 = vst [vmem:[%s3161_s26 + $0x120] sm:$0xff] %v491_v36  ;;  %494 = vst [vmem:[%s3161_s26 + $0x128] sm:$0xff] %v493_v37  ;;  %v497_v39 = vld [vmem:[%s3156_s25 + $0x238] sm:$0xff]  ;;  %v499_v40 = vld [vmem:[%s3156_s25 + $0x240] sm:$0xff] }
  0x25   : > { %496 = vst [vmem:[%s3161_s26 + $0x130] sm:$0xff] %v495_v38  ;;  %v501_v41 = vld [vmem:[%s3156_s25 + $0x248] sm:$0xff]  ;;  %498 = vst [vmem:[%s3161_s26 + $0x138] sm:$0xff] %v497_v39  ;;  %v503_v42 = vld [vmem:[%s3156_s25 + $0x250] sm:$0xff] }
  0x26   : > { %500 = vst [vmem:[%s3161_s26 + $0x140] sm:$0xff] %v499_v40  ;;  %502 = vst [vmem:[%s3161_s26 + $0x148] sm:$0xff] %v501_v41  ;;  %v505_v43 = vld [vmem:[%s3156_s25 + $0x258] sm:$0xff]  ;;  %v507_v44 = vld [vmem:[%s3156_s25 + $0x260] sm:$0xff] }
  0x27   : > { %504 = vst [vmem:[%s3161_s26 + $0x150] sm:$0xff] %v503_v42  ;;  %506 = vst [vmem:[%s3161_s26 + $0x158] sm:$0xff] %v505_v43  ;;  %v509_v45 = vld [vmem:[%s3156_s25 + $0x268] sm:$0xff]  ;;  %v511_v46 = vld [vmem:[%s3156_s25 + $0x270] sm:$0xff] }
  0x28   : > { %508 = vst [vmem:[%s3161_s26 + $0x160] sm:$0xff] %v507_v44  ;;  %v513_v47 = vld [vmem:[%s3156_s25 + $0x278] sm:$0xff]  ;;  %510 = vst [vmem:[%s3161_s26 + $0x168] sm:$0xff] %v509_v45  ;;  %v515_v48 = vld [vmem:[%s3156_s25 + $0x280] sm:$0xff] }
  0x29   : > { %512 = vst [vmem:[%s3161_s26 + $0x170] sm:$0xff] %v511_v46  ;;  %514 = vst [vmem:[%s3161_s26 + $0x178] sm:$0xff] %v513_v47  ;;  %v517_v49 = vld [vmem:[%s3156_s25 + $0x288] sm:$0xff]  ;;  %v519_v50 = vld [vmem:[%s3156_s25 + $0x290] sm:$0xff] }
  0x2a   : > { %516 = vst [vmem:[%s3161_s26 + $0x180] sm:$0xff] %v515_v48  ;;  %518 = vst [vmem:[%s3161_s26 + $0x188] sm:$0xff] %v517_v49  ;;  %v521_v51 = vld [vmem:[%s3156_s25 + $0x298] sm:$0xff]  ;;  %v523_v52 = vld [vmem:[%s3156_s25 + $0x2a0] sm:$0xff] }
  0x2b   : > { %520 = vst [vmem:[%s3161_s26 + $0x190] sm:$0xff] %v519_v50  ;;  %v525_v53 = vld [vmem:[%s3156_s25 + $0x2a8] sm:$0xff]  ;;  %522 = vst [vmem:[%s3161_s26 + $0x198] sm:$0xff] %v521_v51  ;;  %v527_v54 = vld [vmem:[%s3156_s25 + $0x2b0] sm:$0xff] }
  0x2c   : > { %524 = vst [vmem:[%s3161_s26 + $0x1a0] sm:$0xff] %v523_v52  ;;  %526 = vst [vmem:[%s3161_s26 + $0x1a8] sm:$0xff] %v525_v53  ;;  %v529_v55 = vld [vmem:[%s3156_s25 + $0x2b8] sm:$0xff]  ;;  %v531_v56 = vld [vmem:[%s3156_s25 + $0x2c0] sm:$0xff] }
  0x2d   : > { %528 = vst [vmem:[%s3161_s26 + $0x1b0] sm:$0xff] %v527_v54  ;;  %530 = vst [vmem:[%s3161_s26 + $0x1b8] sm:$0xff] %v529_v55  ;;  %v533_v57 = vld [vmem:[%s3156_s25 + $0x2c8] sm:$0xff]  ;;  %v535_v58 = vld [vmem:[%s3156_s25 + $0x2d0] sm:$0xff] }
  0x2e   : > { %532 = vst [vmem:[%s3161_s26 + $0x1c0] sm:$0xff] %v531_v56  ;;  %v537_v59 = vld [vmem:[%s3156_s25 + $0x2d8] sm:$0xff]  ;;  %534 = vst [vmem:[%s3161_s26 + $0x1c8] sm:$0xff] %v533_v57  ;;  %v539_v60 = vld [vmem:[%s3156_s25 + $0x2e0] sm:$0xff] }
  0x2f   : > { %536 = vst [vmem:[%s3161_s26 + $0x1d0] sm:$0xff] %v535_v58  ;;  %538 = vst [vmem:[%s3161_s26 + $0x1d8] sm:$0xff] %v537_v59  ;;  %v541_v61 = vld [vmem:[%s3156_s25 + $0x2e8] sm:$0xff]  ;;  %v543_v62 = vld [vmem:[%s3156_s25 + $0x2f0] sm:$0xff] }
  0x30   : > { %540 = vst [vmem:[%s3161_s26 + $0x1e0] sm:$0xff] %v539_v60  ;;  %542 = vst [vmem:[%s3161_s26 + $0x1e8] sm:$0xff] %v541_v61  ;;  %v545_v63 = vld [vmem:[%s3156_s25 + $0x2f8] sm:$0xff]  ;;  %v547_v0 = vld [vmem:[%s3156_s25 + $0x400] sm:$0xff] }
  0x31   : > { %544 = vst [vmem:[%s3161_s26 + $0x1f0] sm:$0xff] %v543_v62  ;;  %v549_v1 = vld [vmem:[%s3156_s25 + $0x408] sm:$0xff]  ;;  %546 = vst [vmem:[%s3161_s26 + $0x1f8] sm:$0xff] %v545_v63  ;;  %v551_v2 = vld [vmem:[%s3156_s25 + $0x410] sm:$0xff] }
  0x32   : > { %548 = vst [vmem:[%s3161_s26 + $0x200] sm:$0xff] %v547_v0  ;;  %550 = vst [vmem:[%s3161_s26 + $0x208] sm:$0xff] %v549_v1  ;;  %v553_v3 = vld [vmem:[%s3156_s25 + $0x418] sm:$0xff]  ;;  %v555_v4 = vld [vmem:[%s3156_s25 + $0x420] sm:$0xff] }
  0x33   : > { %552 = vst [vmem:[%s3161_s26 + $0x210] sm:$0xff] %v551_v2  ;;  %554 = vst [vmem:[%s3161_s26 + $0x218] sm:$0xff] %v553_v3  ;;  %v557_v5 = vld [vmem:[%s3156_s25 + $0x428] sm:$0xff]  ;;  %v559_v6 = vld [vmem:[%s3156_s25 + $0x430] sm:$0xff] }
  0x34   : > { %556 = vst [vmem:[%s3161_s26 + $0x220] sm:$0xff] %v555_v4  ;;  %v561_v7 = vld [vmem:[%s3156_s25 + $0x438] sm:$0xff]  ;;  %558 = vst [vmem:[%s3161_s26 + $0x228] sm:$0xff] %v557_v5  ;;  %v563_v8 = vld [vmem:[%s3156_s25 + $0x440] sm:$0xff] }
  0x35   : > { %560 = vst [vmem:[%s3161_s26 + $0x230] sm:$0xff] %v559_v6  ;;  %562 = vst [vmem:[%s3161_s26 + $0x238] sm:$0xff] %v561_v7  ;;  %v565_v9 = vld [vmem:[%s3156_s25 + $0x448] sm:$0xff]  ;;  %v567_v10 = vld [vmem:[%s3156_s25 + $0x450] sm:$0xff] }
  0x36   : > { %564 = vst [vmem:[%s3161_s26 + $0x240] sm:$0xff] %v563_v8  ;;  %566 = vst [vmem:[%s3161_s26 + $0x248] sm:$0xff] %v565_v9  ;;  %v569_v11 = vld [vmem:[%s3156_s25 + $0x458] sm:$0xff]  ;;  %v571_v12 = vld [vmem:[%s3156_s25 + $0x460] sm:$0xff] }
  0x37   : > { %568 = vst [vmem:[%s3161_s26 + $0x250] sm:$0xff] %v567_v10  ;;  %v573_v13 = vld [vmem:[%s3156_s25 + $0x468] sm:$0xff]  ;;  %570 = vst [vmem:[%s3161_s26 + $0x258] sm:$0xff] %v569_v11  ;;  %v575_v14 = vld [vmem:[%s3156_s25 + $0x470] sm:$0xff] }
  0x38   : > { %572 = vst [vmem:[%s3161_s26 + $0x260] sm:$0xff] %v571_v12  ;;  %574 = vst [vmem:[%s3161_s26 + $0x268] sm:$0xff] %v573_v13  ;;  %v577_v15 = vld [vmem:[%s3156_s25 + $0x478] sm:$0xff]  ;;  %v579_v16 = vld [vmem:[%s3156_s25 + $0x480] sm:$0xff] }
  0x39   : > { %576 = vst [vmem:[%s3161_s26 + $0x270] sm:$0xff] %v575_v14  ;;  %578 = vst [vmem:[%s3161_s26 + $0x278] sm:$0xff] %v577_v15  ;;  %v581_v17 = vld [vmem:[%s3156_s25 + $0x488] sm:$0xff]  ;;  %v583_v18 = vld [vmem:[%s3156_s25 + $0x490] sm:$0xff] }
  0x3a   : > { %580 = vst [vmem:[%s3161_s26 + $0x280] sm:$0xff] %v579_v16  ;;  %v585_v19 = vld [vmem:[%s3156_s25 + $0x498] sm:$0xff]  ;;  %582 = vst [vmem:[%s3161_s26 + $0x288] sm:$0xff] %v581_v17  ;;  %v587_v20 = vld [vmem:[%s3156_s25 + $0x4a0] sm:$0xff] }
  0x3b   : > { %584 = vst [vmem:[%s3161_s26 + $0x290] sm:$0xff] %v583_v18  ;;  %586 = vst [vmem:[%s3161_s26 + $0x298] sm:$0xff] %v585_v19  ;;  %v589_v21 = vld [vmem:[%s3156_s25 + $0x4a8] sm:$0xff]  ;;  %v591_v22 = vld [vmem:[%s3156_s25 + $0x4b0] sm:$0xff] }
  0x3c   : > { %588 = vst [vmem:[%s3161_s26 + $0x2a0] sm:$0xff] %v587_v20  ;;  %590 = vst [vmem:[%s3161_s26 + $0x2a8] sm:$0xff] %v589_v21  ;;  %v593_v23 = vld [vmem:[%s3156_s25 + $0x4b8] sm:$0xff]  ;;  %v595_v24 = vld [vmem:[%s3156_s25 + $0x4c0] sm:$0xff] }
  0x3d   : > { %592 = vst [vmem:[%s3161_s26 + $0x2b0] sm:$0xff] %v591_v22  ;;  %v597_v25 = vld [vmem:[%s3156_s25 + $0x4c8] sm:$0xff]  ;;  %594 = vst [vmem:[%s3161_s26 + $0x2b8] sm:$0xff] %v593_v23  ;;  %v599_v26 = vld [vmem:[%s3156_s25 + $0x4d0] sm:$0xff] }
  0x3e   : > { %596 = vst [vmem:[%s3161_s26 + $0x2c0] sm:$0xff] %v595_v24  ;;  %598 = vst [vmem:[%s3161_s26 + $0x2c8] sm:$0xff] %v597_v25  ;;  %v601_v27 = vld [vmem:[%s3156_s25 + $0x4d8] sm:$0xff]  ;;  %v603_v28 = vld [vmem:[%s3156_s25 + $0x4e0] sm:$0xff] }
  0x3f   : > { %600 = vst [vmem:[%s3161_s26 + $0x2d0] sm:$0xff] %v599_v26  ;;  %602 = vst [vmem:[%s3161_s26 + $0x2d8] sm:$0xff] %v601_v27  ;;  %v605_v29 = vld [vmem:[%s3156_s25 + $0x4e8] sm:$0xff]  ;;  %v607_v30 = vld [vmem:[%s3156_s25 + $0x4f0] sm:$0xff] }
  0x40   : > { %604 = vst [vmem:[%s3161_s26 + $0x2e0] sm:$0xff] %v603_v28  ;;  %v609_v31 = vld [vmem:[%s3156_s25 + $0x4f8] sm:$0xff]  ;;  %606 = vst [vmem:[%s3161_s26 + $0x2e8] sm:$0xff] %v605_v29  ;;  %v611_v32 = vld [vmem:[%s3156_s25 + $0x600] sm:$0xff] }
  0x41   : > { %608 = vst [vmem:[%s3161_s26 + $0x2f0] sm:$0xff] %v607_v30  ;;  %610 = vst [vmem:[%s3161_s26 + $0x2f8] sm:$0xff] %v609_v31  ;;  %v613_v33 = vld [vmem:[%s3156_s25 + $0x608] sm:$0xff]  ;;  %v615_v34 = vld [vmem:[%s3156_s25 + $0x610] sm:$0xff] }
  0x42   : > { %612 = vst [vmem:[%s3161_s26 + $0x300] sm:$0xff] %v611_v32  ;;  %614 = vst [vmem:[%s3161_s26 + $0x308] sm:$0xff] %v613_v33  ;;  %v617_v35 = vld [vmem:[%s3156_s25 + $0x618] sm:$0xff]  ;;  %v619_v36 = vld [vmem:[%s3156_s25 + $0x620] sm:$0xff] }
  0x43   : > { %616 = vst [vmem:[%s3161_s26 + $0x310] sm:$0xff] %v615_v34  ;;  %v621_v37 = vld [vmem:[%s3156_s25 + $0x628] sm:$0xff]  ;;  %618 = vst [vmem:[%s3161_s26 + $0x318] sm:$0xff] %v617_v35  ;;  %v623_v38 = vld [vmem:[%s3156_s25 + $0x630] sm:$0xff] }
  0x44   : > { %620 = vst [vmem:[%s3161_s26 + $0x320] sm:$0xff] %v619_v36  ;;  %622 = vst [vmem:[%s3161_s26 + $0x328] sm:$0xff] %v621_v37  ;;  %v625_v39 = vld [vmem:[%s3156_s25 + $0x638] sm:$0xff]  ;;  %v627_v40 = vld [vmem:[%s3156_s25 + $0x640] sm:$0xff] }
  0x45   : > { %624 = vst [vmem:[%s3161_s26 + $0x330] sm:$0xff] %v623_v38  ;;  %626 = vst [vmem:[%s3161_s26 + $0x338] sm:$0xff] %v625_v39  ;;  %v629_v41 = vld [vmem:[%s3156_s25 + $0x648] sm:$0xff]  ;;  %v631_v42 = vld [vmem:[%s3156_s25 + $0x650] sm:$0xff] }
  0x46   : > { %628 = vst [vmem:[%s3161_s26 + $0x340] sm:$0xff] %v627_v40  ;;  %v633_v43 = vld [vmem:[%s3156_s25 + $0x658] sm:$0xff]  ;;  %630 = vst [vmem:[%s3161_s26 + $0x348] sm:$0xff] %v629_v41  ;;  %v635_v44 = vld [vmem:[%s3156_s25 + $0x660] sm:$0xff] }
  0x47   : > { %632 = vst [vmem:[%s3161_s26 + $0x350] sm:$0xff] %v631_v42  ;;  %634 = vst [vmem:[%s3161_s26 + $0x358] sm:$0xff] %v633_v43  ;;  %v637_v45 = vld [vmem:[%s3156_s25 + $0x668] sm:$0xff]  ;;  %v639_v46 = vld [vmem:[%s3156_s25 + $0x670] sm:$0xff] }
  0x48   : > { %636 = vst [vmem:[%s3161_s26 + $0x360] sm:$0xff] %v635_v44  ;;  %638 = vst [vmem:[%s3161_s26 + $0x368] sm:$0xff] %v637_v45  ;;  %v641_v47 = vld [vmem:[%s3156_s25 + $0x678] sm:$0xff]  ;;  %v643_v48 = vld [vmem:[%s3156_s25 + $0x680] sm:$0xff] }
  0x49   : > { %640 = vst [vmem:[%s3161_s26 + $0x370] sm:$0xff] %v639_v46  ;;  %v645_v49 = vld [vmem:[%s3156_s25 + $0x688] sm:$0xff]  ;;  %642 = vst [vmem:[%s3161_s26 + $0x378] sm:$0xff] %v641_v47  ;;  %v647_v50 = vld [vmem:[%s3156_s25 + $0x690] sm:$0xff] }
  0x4a   : > { %644 = vst [vmem:[%s3161_s26 + $0x380] sm:$0xff] %v643_v48  ;;  %646 = vst [vmem:[%s3161_s26 + $0x388] sm:$0xff] %v645_v49  ;;  %v649_v51 = vld [vmem:[%s3156_s25 + $0x698] sm:$0xff]  ;;  %v651_v52 = vld [vmem:[%s3156_s25 + $0x6a0] sm:$0xff] }
  0x4b   : > { %648 = vst [vmem:[%s3161_s26 + $0x390] sm:$0xff] %v647_v50  ;;  %650 = vst [vmem:[%s3161_s26 + $0x398] sm:$0xff] %v649_v51  ;;  %v653_v53 = vld [vmem:[%s3156_s25 + $0x6a8] sm:$0xff]  ;;  %v655_v54 = vld [vmem:[%s3156_s25 + $0x6b0] sm:$0xff] }
  0x4c   : > { %652 = vst [vmem:[%s3161_s26 + $0x3a0] sm:$0xff] %v651_v52  ;;  %v657_v55 = vld [vmem:[%s3156_s25 + $0x6b8] sm:$0xff]  ;;  %654 = vst [vmem:[%s3161_s26 + $0x3a8] sm:$0xff] %v653_v53  ;;  %v659_v56 = vld [vmem:[%s3156_s25 + $0x6c0] sm:$0xff] }
  0x4d   : > { %656 = vst [vmem:[%s3161_s26 + $0x3b0] sm:$0xff] %v655_v54  ;;  %658 = vst [vmem:[%s3161_s26 + $0x3b8] sm:$0xff] %v657_v55  ;;  %v661_v57 = vld [vmem:[%s3156_s25 + $0x6c8] sm:$0xff]  ;;  %v663_v58 = vld [vmem:[%s3156_s25 + $0x6d0] sm:$0xff] }
  0x4e   : > { %660 = vst [vmem:[%s3161_s26 + $0x3c0] sm:$0xff] %v659_v56  ;;  %662 = vst [vmem:[%s3161_s26 + $0x3c8] sm:$0xff] %v661_v57  ;;  %v665_v59 = vld [vmem:[%s3156_s25 + $0x6d8] sm:$0xff]  ;;  %v667_v60 = vld [vmem:[%s3156_s25 + $0x6e0] sm:$0xff] }
  0x4f   : > { %664 = vst [vmem:[%s3161_s26 + $0x3d0] sm:$0xff] %v663_v58  ;;  %v669_v61 = vld [vmem:[%s3156_s25 + $0x6e8] sm:$0xff]  ;;  %666 = vst [vmem:[%s3161_s26 + $0x3d8] sm:$0xff] %v665_v59  ;;  %v671_v62 = vld [vmem:[%s3156_s25 + $0x6f0] sm:$0xff] }
  0x50   : > { %668 = vst [vmem:[%s3161_s26 + $0x3e0] sm:$0xff] %v667_v60  ;;  %670 = vst [vmem:[%s3161_s26 + $0x3e8] sm:$0xff] %v669_v61  ;;  %v673_v63 = vld [vmem:[%s3156_s25 + $0x6f8] sm:$0xff] }
  0x51   : > { %672 = vst [vmem:[%s3161_s26 + $0x3f0] sm:$0xff] %v671_v62  ;;  %674 = vst [vmem:[%s3161_s26 + $0x3f8] sm:$0xff] %v673_v63 }
  0x52 PF: > { %p2408_p5 = scmp.ge.s32.totalorder %s3099_s14, 1  ;;  %p679_p6 = scmp.lt.s32.totalorder %s3099_s14, 3 }
  0x54   : > { %p680_p7 = pnand %p2408_p5, %p679_p6 }
  0x56   : > { %683 = sbr.rel (%p680_p7) target bundleno = 450 (0x1c2), region = 66 }
  0x5d   : > { %v716_v0 = vld [vmem:[%s4084_s1] sm:$0xff]  ;;  %v717_v1 = vld [vmem:[%s4084_s1 + $0x8] sm:$0xff]  ;;  %v718_v2 = vld [vmem:[%s4084_s1 + $0x10] sm:$0xff]  ;;  %vm849_vm0 = vcmask 1040384   ;;  %s686_s6 = sand.u32 1, %s3091_s12   ;;  %vm3101_vm1 = vmmov 1  }
  0x5e   : > { %v3012_v3 = vpack.c.bf16 %v717_v1, %v716_v0  ;;  %v719_v4 = vld [vmem:[%s4084_s1 + $0x18] sm:$0x1]  ;;  %s2409_s9 = sshll.u32 %s686_s6, 10  ;;  %vm3431_vm2 = vmpackc.low %vm849_vm0, %vm3101_vm1  ;;  %vm752_vm3 = vcmask 203776   ;;  %s2410_s11 = sshll.u32 %s2401_s15, 5 }
  0x5f   : > { %v3016_v5 = vpack.c.bf16 %v719_v4, %v718_v2  ;;  %s3435_s10 = scalar_lea.vmem [#allocation2], %s2409_s9  ;;  %p711_p8 = scmp.lt.s32.totalorder %s2410_s11, 63 }
  0x60   : > { %3013 = vmatprep.subr.bf16.mxu0 %v3012_v3  ;;  %3023 = vmatprep.subr.bf16.mxu1 %v3012_v3  ;;  %v720_v7 = vld [vmem:[%s3435_s10] sm:$0xff]  ;;  %v721_v9 = vld [vmem:[%s3435_s10 + $0x8] sm:$0xff]  ;;  %v722_v11 = vld [vmem:[%s3435_s10 + $0x10] sm:$0xff] }
  0x61   : > { %v2445_v8 = vld [vmem:[%s3435_s10 + $0x100] sm:$0xff]  ;;  %3015 = vmatpush3.bf16.msra.mxu0 %v3012_v3  ;;  %3025 = vmatpush3.bf16.msra.mxu1 %v3012_v3  ;;  %v2446_v10 = vld [vmem:[%s3435_s10 + $0x108] sm:$0xff]  ;;  %v2447_v12 = vld [vmem:[%s3435_s10 + $0x110] sm:$0xff]  ;;  %s4170_s11 = smov (!%p711_p8, %s2410_s11), 63 }
  0x62   : > { %3018 = vmatprep.subr.msk.bf16.mxu0 %vm3431_vm2, %v3016_v5  ;;  %3028 = vmatprep.subr.msk.bf16.mxu1 %vm3431_vm2, %v3016_v5  ;;  %v723_v13 = vld [vmem:[%s3435_s10 + $0x18] sm:$0xff]  ;;  %v724_v15 = vld [vmem:[%s3435_s10 + $0x20] sm:$0xff]  ;;  %v725_v17 = vld [vmem:[%s3435_s10 + $0x28] sm:$0xff]  ;;  %s2411_s15 = sshll.u32 %s4170_s11, 3 }
  0x63   : > { %2796 = vmatprep.mubr.msk.f32.mxu0 %vm752_vm3, %v720_v7  ;;  %2852 = vmatprep.mubr.msk.f32.mxu1 %vm752_vm3, %v2445_v8  ;;  %v2448_v14 = vld [vmem:[%s3435_s10 + $0x118] sm:$0xff]  ;;  %v2449_v16 = vld [vmem:[%s3435_s10 + $0x120] sm:$0xff]  ;;  %v2450_v18 = vld [vmem:[%s3435_s10 + $0x128] sm:$0xff]  ;;  %s3918_s20 = scalar_lea.vmem %s4086_s3, %s2411_s15 }
  0x64   : > { %v726_v19 = vld [vmem:[%s3435_s10 + $0x30] sm:$0xff]  ;;  %v727_v21 = vld [vmem:[%s3435_s10 + $0x38] sm:$0xff]  ;;  %v728_v23 = vld [vmem:[%s3435_s10 + $0x40] sm:$0xff] }
  0x65   : > { %3021 = vmatpush3.bf16.msk.msra.mxu0 %vm3431_vm2, %v3016_v5  ;;  %3031 = vmatpush3.bf16.msk.msra.mxu1 %vm3431_vm2, %v3016_v5  ;;  %v2451_v20 = vld [vmem:[%s3435_s10 + $0x130] sm:$0xff]  ;;  %v2452_v22 = vld [vmem:[%s3435_s10 + $0x138] sm:$0xff]  ;;  %v2453_v24 = vld [vmem:[%s3435_s10 + $0x140] sm:$0xff] }
  0x66   : > { %3033 = vmatprep.subr.bf16.mxu0 %v3012_v3  ;;  %3043 = vmatprep.subr.bf16.mxu1 %v3012_v3  ;;  %v729_v25 = vld [vmem:[%s3435_s10 + $0x48] sm:$0xff]  ;;  %v730_v27 = vld [vmem:[%s3435_s10 + $0x50] sm:$0xff]  ;;  %v731_v29 = vld [vmem:[%s3435_s10 + $0x58] sm:$0xff] }
  0x67   : > { %v2454_v26 = vld [vmem:[%s3435_s10 + $0x148] sm:$0xff]  ;;  %v2455_v28 = vld [vmem:[%s3435_s10 + $0x150] sm:$0xff]  ;;  %v2456_v30 = vld [vmem:[%s3435_s10 + $0x158] sm:$0xff] }
  0x68   : > { %2797 = vmatmul.mubr.msk.f32.vlgmr.msra.gmra.mrb[0].mxu0 %vm752_vm3, %v721_v9  ;;  %2853 = vmatmul.mubr.msk.f32.vlgmr.msra.gmra.mrb[0].mxu1 %vm752_vm3, %v2446_v10  ;;  %v732_v31 = vld [vmem:[%s3435_s10 + $0x60] sm:$0xff]  ;;  %v733_v33 = vld [vmem:[%s3435_s10 + $0x68] sm:$0xff]  ;;  %v734_v35 = vld [vmem:[%s3435_s10 + $0x70] sm:$0xff] }
  0x69   : > { %3035 = vmatpush3.bf16.msra.mxu0 %v3012_v3  ;;  %3045 = vmatpush3.bf16.msra.mxu1 %v3012_v3  ;;  %v2457_v32 = vld [vmem:[%s3435_s10 + $0x160] sm:$0xff]  ;;  %v2458_v34 = vld [vmem:[%s3435_s10 + $0x168] sm:$0xff]  ;;  %v2459_v36 = vld [vmem:[%s3435_s10 + $0x170] sm:$0xff] }
  0x6a   : > { %2799 = vmatprep.mubr.msk.f32.mxu0 %vm752_vm3, %v722_v11  ;;  %2855 = vmatprep.mubr.msk.f32.mxu1 %vm752_vm3, %v2447_v12  ;;  %v735_v37 = vld [vmem:[%s3435_s10 + $0x78] sm:$0xff]  ;;  %v736_v39 = vld [vmem:[%s3435_s10 + $0x80] sm:$0xff]  ;;  %v737_v41 = vld [vmem:[%s3435_s10 + $0x88] sm:$0xff] }
  0x6b   : > { %3038 = vmatprep.subr.msk.bf16.mxu0 %vm3431_vm2, %v3016_v5  ;;  %3048 = vmatprep.subr.msk.bf16.mxu1 %vm3431_vm2, %v3016_v5  ;;  %v2460_v38 = vld [vmem:[%s3435_s10 + $0x178] sm:$0xff]  ;;  %v2461_v40 = vld [vmem:[%s3435_s10 + $0x180] sm:$0xff]  ;;  %v2462_v42 = vld [vmem:[%s3435_s10 + $0x188] sm:$0xff] }
  0x6c   : > { %2800 = vmatmul.mubr.msk.f32.gmra.mrb[2].mxu0 %vm752_vm3, %v723_v13  ;;  %2856 = vmatmul.mubr.msk.f32.gmra.mrb[2].mxu1 %vm752_vm3, %v2448_v14  ;;  %v738_v43 = vld [vmem:[%s3435_s10 + $0x90] sm:$0xff]  ;;  %v739_v45 = vld [vmem:[%s3435_s10 + $0x98] sm:$0xff]  ;;  %v740_v47 = vld [vmem:[%s3435_s10 + $0xa0] sm:$0xff] }
  0x6d   : > { %2802 = vmatprep.mubr.msk.f32.mxu0 %vm752_vm3, %v724_v15  ;;  %2858 = vmatprep.mubr.msk.f32.mxu1 %vm752_vm3, %v2449_v16  ;;  %v2463_v44 = vld [vmem:[%s3435_s10 + $0x190] sm:$0xff]  ;;  %v2464_v46 = vld [vmem:[%s3435_s10 + $0x198] sm:$0xff]  ;;  %v2465_v48 = vld [vmem:[%s3435_s10 + $0x1a0] sm:$0xff] }
  0x6e   : > { %3041 = vmatpush3.bf16.msk.msra.mxu0 %vm3431_vm2, %v3016_v5  ;;  %3051 = vmatpush3.bf16.msk.msra.mxu1 %vm3431_vm2, %v3016_v5  ;;  %v741_v49 = vld [vmem:[%s3435_s10 + $0xa8] sm:$0xff]  ;;  %v742_v51 = vld [vmem:[%s3435_s10 + $0xb0] sm:$0xff]  ;;  %v743_v53 = vld [vmem:[%s3435_s10 + $0xb8] sm:$0xff] }
  0x6f   : > { %v2466_v50 = vld [vmem:[%s3435_s10 + $0x1a8] sm:$0xff]  ;;  %v2467_v52 = vld [vmem:[%s3435_s10 + $0x1b0] sm:$0xff]  ;;  %v2468_v54 = vld [vmem:[%s3435_s10 + $0x1b8] sm:$0xff] }
  0x70   : > { %2803 = vmatmul.mubr.msk.f32.gmra.mrb[4].mxu0 %vm752_vm3, %v725_v17  ;;  %2859 = vmatmul.mubr.msk.f32.gmra.mrb[4].mxu1 %vm752_vm3, %v2450_v18  ;;  %v744_v55 = vld [vmem:[%s3435_s10 + $0xc0] sm:$0xff]  ;;  %v745_v57 = vld [vmem:[%s3435_s10 + $0xc8] sm:$0xff]  ;;  %v746_v59 = vld [vmem:[%s3435_s10 + $0xd0] sm:$0xff] }
  0x71   : > { %2805 = vmatprep.mubr.msk.f32.mxu0 %vm752_vm3, %v726_v19  ;;  %2861 = vmatprep.mubr.msk.f32.mxu1 %vm752_vm3, %v2451_v20  ;;  %v2469_v56 = vld [vmem:[%s3435_s10 + $0x1c0] sm:$0xff]  ;;  %v2470_v58 = vld [vmem:[%s3435_s10 + $0x1c8] sm:$0xff]  ;;  %v2471_v60 = vld [vmem:[%s3435_s10 + $0x1d0] sm:$0xff] }
  0x72   : > { %v747_v61 = vld [vmem:[%s3435_s10 + $0xd8] sm:$0xff]  ;;  %v748_v63 = vld [vmem:[%s3435_s10 + $0xe0] sm:$0xff]  ;;  %v749_v1 = vld [vmem:[%s3435_s10 + $0xe8] sm:$0xff] }
  0x73   : > { %v2472_v62 = vld [vmem:[%s3435_s10 + $0x1d8] sm:$0xff]  ;;  %v2473_v0 = vld [vmem:[%s3435_s10 + $0x1e0] sm:$0xff]  ;;  %v2474_v2 = vld [vmem:[%s3435_s10 + $0x1e8] sm:$0xff] }
  0x74   : > { %2806 = vmatmul.mubr.msk.f32.gmra.mrb[6].mxu0 %vm752_vm3, %v727_v21  ;;  %2862 = vmatmul.mubr.msk.f32.gmra.mrb[6].mxu1 %vm752_vm3, %v2452_v22  ;;  %v750_v3 = vld [vmem:[%s3435_s10 + $0xf0] sm:$0xff]  ;;  %v751_v5 = vld [vmem:[%s3435_s10 + $0xf8] sm:$0xff]  ;;  %v2510_v7 = vld [vmem:[%s3435_s10 + $0x200] sm:$0xff] }
  0x75   : > { %2808 = vmatprep.mubr.msk.f32.mxu0 %vm752_vm3, %v728_v23  ;;  %2864 = vmatprep.mubr.msk.f32.mxu1 %vm752_vm3, %v2453_v24  ;;  %v2475_v4 = vld [vmem:[%s3435_s10 + $0x1f0] sm:$0xff]  ;;  %v2476_v6 = vld [vmem:[%s3435_s10 + $0x1f8] sm:$0xff]  ;;  %v2575_v8 = vld [vmem:[%s3435_s10 + $0x300] sm:$0xff] }
  0x76   : > { %v2511_v9 = vld [vmem:[%s3435_s10 + $0x208] sm:$0xff]  ;;  %v2512_v11 = vld [vmem:[%s3435_s10 + $0x210] sm:$0xff]  ;;  %v2513_v13 = vld [vmem:[%s3435_s10 + $0x218] sm:$0xff] }
  0x77   : > { %v2576_v10 = vld [vmem:[%s3435_s10 + $0x308] sm:$0xff]  ;;  %v2577_v12 = vld [vmem:[%s3435_s10 + $0x310] sm:$0xff]  ;;  %v2578_v14 = vld [vmem:[%s3435_s10 + $0x318] sm:$0xff] }
  0x78   : > { %2809 = vmatmul.mubr.msk.f32.gmra.mrb[8].mxu0 %vm752_vm3, %v729_v25  ;;  %2865 = vmatmul.mubr.msk.f32.gmra.mrb[8].mxu1 %vm752_vm3, %v2454_v26  ;;  %v2514_v15 = vld [vmem:[%s3435_s10 + $0x220] sm:$0xff]  ;;  %v2515_v17 = vld [vmem:[%s3435_s10 + $0x228] sm:$0xff]  ;;  %v2516_v19 = vld [vmem:[%s3435_s10 + $0x230] sm:$0xff] }
  0x79   : > { %2811 = vmatprep.mubr.msk.f32.mxu0 %vm752_vm3, %v730_v27  ;;  %2867 = vmatprep.mubr.msk.f32.mxu1 %vm752_vm3, %v2455_v28  ;;  %v2579_v16 = vld [vmem:[%s3435_s10 + $0x320] sm:$0xff]  ;;  %v2580_v18 = vld [vmem:[%s3435_s10 + $0x328] sm:$0xff]  ;;  %v2581_v20 = vld [vmem:[%s3435_s10 + $0x330] sm:$0xff] }
  0x7a   : > { %v2517_v21 = vld [vmem:[%s3435_s10 + $0x238] sm:$0xff]  ;;  %v2518_v23 = vld [vmem:[%s3435_s10 + $0x240] sm:$0xff]  ;;  %v2519_v25 = vld [vmem:[%s3435_s10 + $0x248] sm:$0xff] }
  0x7b   : > { %v2582_v22 = vld [vmem:[%s3435_s10 + $0x338] sm:$0xff]  ;;  %v2583_v24 = vld [vmem:[%s3435_s10 + $0x340] sm:$0xff]  ;;  %v2584_v26 = vld [vmem:[%s3435_s10 + $0x348] sm:$0xff] }
  0x7c   : > { %2812 = vmatmul.mubr.msk.f32.gmra.mrb[10].mxu0 %vm752_vm3, %v731_v29  ;;  %2868 = vmatmul.mubr.msk.f32.gmra.mrb[10].mxu1 %vm752_vm3, %v2456_v30  ;;  %v2520_v27 = vld [vmem:[%s3435_s10 + $0x250] sm:$0xff]  ;;  %v2521_v29 = vld [vmem:[%s3435_s10 + $0x258] sm:$0xff] }
  0x7d   : > { %2814 = vmatprep.mubr.msk.f32.mxu0 %vm752_vm3, %v732_v31  ;;  %2870 = vmatprep.mubr.msk.f32.mxu1 %vm752_vm3, %v2457_v32  ;;  %v2585_v28 = vld [vmem:[%s3435_s10 + $0x350] sm:$0xff]  ;;  %v2586_v30 = vld [vmem:[%s3435_s10 + $0x358] sm:$0xff]  ;;  %v2522_v31 = vld [vmem:[%s3435_s10 + $0x260] sm:$0xff] }
  0x7e   : > { %v2587_v32 = vld [vmem:[%s3435_s10 + $0x360] sm:$0xff] }
  0x80   : > { %2815 = vmatmul.mubr.msk.f32.gmra.mrb[12].mxu0 %vm752_vm3, %v733_v33  ;;  %2871 = vmatmul.mubr.msk.f32.gmra.mrb[12].mxu1 %vm752_vm3, %v2458_v34  ;;  %v2523_v33 = vld [vmem:[%s3435_s10 + $0x268] sm:$0xff] }
  0x81   : > { %2817 = vmatprep.mubr.msk.f32.mxu0 %vm752_vm3, %v734_v35  ;;  %2873 = vmatprep.mubr.msk.f32.mxu1 %vm752_vm3, %v2459_v36  ;;  %v2588_v34 = vld [vmem:[%s3435_s10 + $0x368] sm:$0xff]  ;;  %v2524_v35 = vld [vmem:[%s3435_s10 + $0x270] sm:$0xff] }
  0x82   : > { %v2589_v36 = vld [vmem:[%s3435_s10 + $0x370] sm:$0xff] }
  0x84   : > { %2818 = vmatmul.mubr.msk.f32.gmra.mrb[14].mxu0 %vm752_vm3, %v735_v37  ;;  %2874 = vmatmul.mubr.msk.f32.gmra.mrb[14].mxu1 %vm752_vm3, %v2460_v38  ;;  %v2525_v37 = vld [vmem:[%s3435_s10 + $0x278] sm:$0xff] }
  0x85   : > { %2820 = vmatprep.mubr.msk.f32.mxu0 %vm752_vm3, %v736_v39  ;;  %2876 = vmatprep.mubr.msk.f32.mxu1 %vm752_vm3, %v2461_v40  ;;  %v2590_v38 = vld [vmem:[%s3435_s10 + $0x378] sm:$0xff]  ;;  %v2526_v39 = vld [vmem:[%s3435_s10 + $0x280] sm:$0xff] }
  0x86   : > { %v2591_v40 = vld [vmem:[%s3435_s10 + $0x380] sm:$0xff] }
  0x88   : > { %2821 = vmatmul.mubr.msk.f32.gmra.mrb[16].mxu0 %vm752_vm3, %v737_v41  ;;  %2877 = vmatmul.mubr.msk.f32.gmra.mrb[16].mxu1 %vm752_vm3, %v2462_v42  ;;  %v2527_v41 = vld [vmem:[%s3435_s10 + $0x288] sm:$0xff] }
  0x89   : > { %2823 = vmatprep.mubr.msk.f32.mxu0 %vm752_vm3, %v738_v43  ;;  %2879 = vmatprep.mubr.msk.f32.mxu1 %vm752_vm3, %v2463_v44  ;;  %v2592_v42 = vld [vmem:[%s3435_s10 + $0x388] sm:$0xff]  ;;  %v2528_v43 = vld [vmem:[%s3435_s10 + $0x290] sm:$0xff] }
  0x8a   : > { %v2593_v44 = vld [vmem:[%s3435_s10 + $0x390] sm:$0xff] }
  0x8c   : > { %2824 = vmatmul.mubr.msk.f32.gmra.mrb[18].mxu0 %vm752_vm3, %v739_v45  ;;  %2880 = vmatmul.mubr.msk.f32.gmra.mrb[18].mxu1 %vm752_vm3, %v2464_v46  ;;  %v2529_v45 = vld [vmem:[%s3435_s10 + $0x298] sm:$0xff] }
  0x8d   : > { %2826 = vmatprep.mubr.msk.f32.mxu0 %vm752_vm3, %v740_v47  ;;  %2882 = vmatprep.mubr.msk.f32.mxu1 %vm752_vm3, %v2465_v48  ;;  %v2594_v46 = vld [vmem:[%s3435_s10 + $0x398] sm:$0xff]  ;;  %v2530_v47 = vld [vmem:[%s3435_s10 + $0x2a0] sm:$0xff] }
  0x8e   : > { %v2595_v48 = vld [vmem:[%s3435_s10 + $0x3a0] sm:$0xff] }
  0x90   : > { %2827 = vmatmul.mubr.msk.f32.gmra.mrb[20].mxu0 %vm752_vm3, %v741_v49  ;;  %2883 = vmatmul.mubr.msk.f32.gmra.mrb[20].mxu1 %vm752_vm3, %v2466_v50  ;;  %v2531_v49 = vld [vmem:[%s3435_s10 + $0x2a8] sm:$0xff] }
  0x91   : > { %2829 = vmatprep.mubr.msk.f32.mxu0 %vm752_vm3, %v742_v51  ;;  %2885 = vmatprep.mubr.msk.f32.mxu1 %vm752_vm3, %v2467_v52  ;;  %v2596_v50 = vld [vmem:[%s3435_s10 + $0x3a8] sm:$0xff]  ;;  %v2532_v51 = vld [vmem:[%s3435_s10 + $0x2b0] sm:$0xff] }
  0x92   : > { %v2597_v52 = vld [vmem:[%s3435_s10 + $0x3b0] sm:$0xff] }
  0x94   : > { %2830 = vmatmul.mubr.msk.f32.gmra.mrb[22].mxu0 %vm752_vm3, %v743_v53  ;;  %2886 = vmatmul.mubr.msk.f32.gmra.mrb[22].mxu1 %vm752_vm3, %v2468_v54  ;;  %v2533_v53 = vld [vmem:[%s3435_s10 + $0x2b8] sm:$0xff] }
  0x95   : > { %2832 = vmatprep.mubr.msk.f32.mxu0 %vm752_vm3, %v744_v55  ;;  %2888 = vmatprep.mubr.msk.f32.mxu1 %vm752_vm3, %v2469_v56  ;;  %v2598_v54 = vld [vmem:[%s3435_s10 + $0x3b8] sm:$0xff]  ;;  %v2534_v55 = vld [vmem:[%s3435_s10 + $0x2c0] sm:$0xff] }
  0x96   : > { %v2599_v56 = vld [vmem:[%s3435_s10 + $0x3c0] sm:$0xff] }
  0x98   : > { %2833 = vmatmul.mubr.msk.f32.gmra.mrb[24].mxu0 %vm752_vm3, %v745_v57  ;;  %2889 = vmatmul.mubr.msk.f32.gmra.mrb[24].mxu1 %vm752_vm3, %v2470_v58  ;;  %v2535_v57 = vld [vmem:[%s3435_s10 + $0x2c8] sm:$0xff] }
  0x99   : > { %2835 = vmatprep.mubr.msk.f32.mxu0 %vm752_vm3, %v746_v59  ;;  %2891 = vmatprep.mubr.msk.f32.mxu1 %vm752_vm3, %v2471_v60  ;;  %v2600_v58 = vld [vmem:[%s3435_s10 + $0x3c8] sm:$0xff]  ;;  %v2536_v59 = vld [vmem:[%s3435_s10 + $0x2d0] sm:$0xff] }
  0x9a   : > { %v2601_v60 = vld [vmem:[%s3435_s10 + $0x3d0] sm:$0xff] }
  0x9c   : > { %2836 = vmatmul.mubr.msk.f32.gmra.mrb[26].mxu0 %vm752_vm3, %v747_v61  ;;  %2892 = vmatmul.mubr.msk.f32.gmra.mrb[26].mxu1 %vm752_vm3, %v2472_v62  ;;  %v2537_v61 = vld [vmem:[%s3435_s10 + $0x2d8] sm:$0xff] }
  0x9d   : > { %2838 = vmatprep.mubr.msk.f32.mxu0 %vm752_vm3, %v748_v63  ;;  %2894 = vmatprep.mubr.msk.f32.mxu1 %vm752_vm3, %v2473_v0  ;;  %v2602_v62 = vld [vmem:[%s3435_s10 + $0x3d8] sm:$0xff]  ;;  %v2538_v63 = vld [vmem:[%s3435_s10 + $0x2e0] sm:$0xff] }
  0x9e   : > { %v2603_v0 = vld [vmem:[%s3435_s10 + $0x3e0] sm:$0xff] }
  0xa0   : > { %2839 = vmatmul.mubr.msk.f32.gmra.mrb[28].mxu0 %vm752_vm3, %v749_v1  ;;  %2895 = vmatmul.mubr.msk.f32.gmra.mrb[28].mxu1 %vm752_vm3, %v2474_v2  ;;  %v2539_v1 = vld [vmem:[%s3435_s10 + $0x2e8] sm:$0xff] }
  0xa1   : > { %2841 = vmatprep.mubr.msk.f32.mxu0 %vm752_vm3, %v750_v3  ;;  %2897 = vmatprep.mubr.msk.f32.mxu1 %vm752_vm3, %v2475_v4  ;;  %v2604_v2 = vld [vmem:[%s3435_s10 + $0x3e8] sm:$0xff]  ;;  %v2540_v3 = vld [vmem:[%s3435_s10 + $0x2f0] sm:$0xff] }
  0xa2   : > { %v2605_v4 = vld [vmem:[%s3435_s10 + $0x3f0] sm:$0xff] }
  0xa4   : > { %2842 = vmatmul.mubr.msk.f32.gmra.mrb[30].mxu0 %vm752_vm3, %v751_v5  ;;  %2898 = vmatmul.mubr.msk.f32.gmra.mrb[30].mxu1 %vm752_vm3, %v2476_v6  ;;  %v2541_v5 = vld [vmem:[%s3435_s10 + $0x2f8] sm:$0xff] }
  0xa5   : > { %2908 = vmatprep.mubr.msk.f32.mxu0 %vm752_vm3, %v2510_v7  ;;  %2964 = vmatprep.mubr.msk.f32.mxu1 %vm752_vm3, %v2575_v8  ;;  %v2606_v6 = vld [vmem:[%s3435_s10 + $0x3f8] sm:$0xff] }
  0xa8   : > { %2909 = vmatmul.mubr.msk.f32.vlgmr.msra.gmra.mrb[32].mxu0 %vm752_vm3, %v2511_v9  ;;  %2965 = vmatmul.mubr.msk.f32.vlgmr.msra.gmra.mrb[32].mxu1 %vm752_vm3, %v2576_v10 }
  0xa9   : > { %2911 = vmatprep.mubr.msk.f32.mxu0 %vm752_vm3, %v2512_v11  ;;  %2967 = vmatprep.mubr.msk.f32.mxu1 %vm752_vm3, %v2577_v12 }
  0xac   : > { %2912 = vmatmul.mubr.msk.f32.gmra.mrb[34].mxu0 %vm752_vm3, %v2513_v13  ;;  %2968 = vmatmul.mubr.msk.f32.gmra.mrb[34].mxu1 %vm752_vm3, %v2578_v14 }
  0xad   : > { %2914 = vmatprep.mubr.msk.f32.mxu0 %vm752_vm3, %v2514_v15  ;;  %2970 = vmatprep.mubr.msk.f32.mxu1 %vm752_vm3, %v2579_v16 }
  0xb0   : > { %2915 = vmatmul.mubr.msk.f32.gmra.mrb[36].mxu0 %vm752_vm3, %v2515_v17  ;;  %2971 = vmatmul.mubr.msk.f32.gmra.mrb[36].mxu1 %vm752_vm3, %v2580_v18 }
  0xb1   : > { %2917 = vmatprep.mubr.msk.f32.mxu0 %vm752_vm3, %v2516_v19  ;;  %2973 = vmatprep.mubr.msk.f32.mxu1 %vm752_vm3, %v2581_v20 }
  0xb4   : > { %2918 = vmatmul.mubr.msk.f32.gmra.mrb[38].mxu0 %vm752_vm3, %v2517_v21  ;;  %2974 = vmatmul.mubr.msk.f32.gmra.mrb[38].mxu1 %vm752_vm3, %v2582_v22 }
  0xb5   : > { %2920 = vmatprep.mubr.msk.f32.mxu0 %vm752_vm3, %v2518_v23  ;;  %2976 = vmatprep.mubr.msk.f32.mxu1 %vm752_vm3, %v2583_v24 }
  0xb8   : > { %2921 = vmatmul.mubr.msk.f32.gmra.mrb[40].mxu0 %vm752_vm3, %v2519_v25  ;;  %2977 = vmatmul.mubr.msk.f32.gmra.mrb[40].mxu1 %vm752_vm3, %v2584_v26 }
  0xb9   : > { %2923 = vmatprep.mubr.msk.f32.mxu0 %vm752_vm3, %v2520_v27  ;;  %2979 = vmatprep.mubr.msk.f32.mxu1 %vm752_vm3, %v2585_v28 }
  0xbc   : > { %2924 = vmatmul.mubr.msk.f32.gmra.mrb[42].mxu0 %vm752_vm3, %v2521_v29  ;;  %2980 = vmatmul.mubr.msk.f32.gmra.mrb[42].mxu1 %vm752_vm3, %v2586_v30 }
  0xbd   : > { %2926 = vmatprep.mubr.msk.f32.mxu0 %vm752_vm3, %v2522_v31  ;;  %2982 = vmatprep.mubr.msk.f32.mxu1 %vm752_vm3, %v2587_v32 }
  0xc0   : > { %2927 = vmatmul.mubr.msk.f32.gmra.mrb[44].mxu0 %vm752_vm3, %v2523_v33  ;;  %2983 = vmatmul.mubr.msk.f32.gmra.mrb[44].mxu1 %vm752_vm3, %v2588_v34 }
  0xc1   : > { %2929 = vmatprep.mubr.msk.f32.mxu0 %vm752_vm3, %v2524_v35  ;;  %2985 = vmatprep.mubr.msk.f32.mxu1 %vm752_vm3, %v2589_v36 }
  0xc4   : > { %2930 = vmatmul.mubr.msk.f32.gmra.mrb[46].mxu0 %vm752_vm3, %v2525_v37  ;;  %2986 = vmatmul.mubr.msk.f32.gmra.mrb[46].mxu1 %vm752_vm3, %v2590_v38 }
  0xc5   : > { %2932 = vmatprep.mubr.msk.f32.mxu0 %vm752_vm3, %v2526_v39  ;;  %2988 = vmatprep.mubr.msk.f32.mxu1 %vm752_vm3, %v2591_v40 }
  0xc8   : > { %2933 = vmatmul.mubr.msk.f32.gmra.mrb[48].mxu0 %vm752_vm3, %v2527_v41  ;;  %2989 = vmatmul.mubr.msk.f32.gmra.mrb[48].mxu1 %vm752_vm3, %v2592_v42 }
  0xc9   : > { %2935 = vmatprep.mubr.msk.f32.mxu0 %vm752_vm3, %v2528_v43  ;;  %2991 = vmatprep.mubr.msk.f32.mxu1 %vm752_vm3, %v2593_v44 }
  0xcc   : > { %2936 = vmatmul.mubr.msk.f32.gmra.mrb[50].mxu0 %vm752_vm3, %v2529_v45  ;;  %2992 = vmatmul.mubr.msk.f32.gmra.mrb[50].mxu1 %vm752_vm3, %v2594_v46 }
  0xcd   : > { %2938 = vmatprep.mubr.msk.f32.mxu0 %vm752_vm3, %v2530_v47  ;;  %2994 = vmatprep.mubr.msk.f32.mxu1 %vm752_vm3, %v2595_v48 }
  0xd0   : > { %2939 = vmatmul.mubr.msk.f32.gmra.mrb[52].mxu0 %vm752_vm3, %v2531_v49  ;;  %2995 = vmatmul.mubr.msk.f32.gmra.mrb[52].mxu1 %vm752_vm3, %v2596_v50 }
  0xd1   : > { %2941 = vmatprep.mubr.msk.f32.mxu0 %vm752_vm3, %v2532_v51  ;;  %2997 = vmatprep.mubr.msk.f32.mxu1 %vm752_vm3, %v2597_v52 }
  0xd4   : > { %2942 = vmatmul.mubr.msk.f32.gmra.mrb[54].mxu0 %vm752_vm3, %v2533_v53  ;;  %2998 = vmatmul.mubr.msk.f32.gmra.mrb[54].mxu1 %vm752_vm3, %v2598_v54 }
  0xd5   : > { %2944 = vmatprep.mubr.msk.f32.mxu0 %vm752_vm3, %v2534_v55  ;;  %3000 = vmatprep.mubr.msk.f32.mxu1 %vm752_vm3, %v2599_v56 }
  0xd8   : > { %2945 = vmatmul.mubr.msk.f32.gmra.mrb[56].mxu0 %vm752_vm3, %v2535_v57  ;;  %3001 = vmatmul.mubr.msk.f32.gmra.mrb[56].mxu1 %vm752_vm3, %v2600_v58 }
  0xd9   : > { %2947 = vmatprep.mubr.msk.f32.mxu0 %vm752_vm3, %v2536_v59  ;;  %3003 = vmatprep.mubr.msk.f32.mxu1 %vm752_vm3, %v2601_v60 }
  0xdc   : > { %2948 = vmatmul.mubr.msk.f32.gmra.mrb[58].mxu0 %vm752_vm3, %v2537_v61  ;;  %3004 = vmatmul.mubr.msk.f32.gmra.mrb[58].mxu1 %vm752_vm3, %v2602_v62 }
  0xdd   : > { %2950 = vmatprep.mubr.msk.f32.mxu0 %vm752_vm3, %v2538_v63  ;;  %3006 = vmatprep.mubr.msk.f32.mxu1 %vm752_vm3, %v2603_v0 }
  0xe0   : > { %2951 = vmatmul.mubr.msk.f32.gmra.mrb[60].mxu0 %vm752_vm3, %v2539_v1  ;;  %3007 = vmatmul.mubr.msk.f32.gmra.mrb[60].mxu1 %vm752_vm3, %v2604_v2 }
  0xe1   : > { %2953 = vmatprep.mubr.msk.f32.mxu0 %vm752_vm3, %v2540_v3  ;;  %3009 = vmatprep.mubr.msk.f32.mxu1 %vm752_vm3, %v2605_v4 }
  0xe4   : > { %2954 = vmatmul.mubr.msk.f32.gmra.mrb[62].mxu0 %vm752_vm3, %v2541_v5  ;;  %3010 = vmatmul.mubr.msk.f32.gmra.mrb[62].mxu1 %vm752_vm3, %v2606_v6 }
 0x13b   : > { %v3709_v7 = vpop.f32.mrb[0].mxu0  ;;  %v3711_v8 = vpop.f32.mrb[0].mxu1 }
 0x13c   : > { %v3715_v10 = vpop.f32.mrb[1].mxu0  ;;  %v3717_v11 = vpop.f32.mrb[1].mxu1 }
 0x13d   : > { %v4120_v2 = vmax.f32 %v3715_v10, %v3717_v11 }
 0x13f   : > { %v3721_v13 = vpop.f32.mrb[2].mxu0  ;;  %v3723_v14 = vpop.f32.mrb[2].mxu1 }
 0x140   : > { %v3727_v16 = vpop.f32.mrb[3].mxu0  ;;  %v3729_v17 = vpop.f32.mrb[3].mxu1  ;;  %v4121_v10 = vmax.f32 %v3721_v13, %v3723_v14 }
 0x143   : > { %v3733_v19 = vpop.f32.mrb[4].mxu0  ;;  %v3735_v20 = vpop.f32.mrb[4].mxu1 }
 0x144   : > { %v3739_v22 = vpop.f32.mrb[5].mxu0  ;;  %v3741_v23 = vpop.f32.mrb[5].mxu1 }
 0x147   : > { %v3745_v25 = vpop.f32.mrb[6].mxu0  ;;  %v3747_v26 = vpop.f32.mrb[6].mxu1 }
 0x148   : > { %v3751_v28 = vpop.f32.mrb[7].mxu0  ;;  %v3753_v29 = vpop.f32.mrb[7].mxu1 }
 0x14b   : > { %v3757_v31 = vpop.f32.mrb[8].mxu0  ;;  %v3759_v32 = vpop.f32.mrb[8].mxu1 }
 0x14c   : > { %v3763_v34 = vpop.f32.mrb[9].mxu0  ;;  %v3765_v35 = vpop.f32.mrb[9].mxu1 }
 0x14f   : > { %v3769_v37 = vpop.f32.mrb[10].mxu0  ;;  %v3771_v38 = vpop.f32.mrb[10].mxu1 }
 0x150   : > { %v3775_v40 = vpop.f32.mrb[11].mxu0  ;;  %v3777_v41 = vpop.f32.mrb[11].mxu1 }
 0x153   : > { %v3781_v43 = vpop.f32.mrb[12].mxu0  ;;  %v3783_v44 = vpop.f32.mrb[12].mxu1 }
 0x154   : > { %v3787_v46 = vpop.f32.mrb[13].mxu0  ;;  %v3789_v47 = vpop.f32.mrb[13].mxu1 }
 0x157   : > { %v3793_v49 = vpop.f32.mrb[14].mxu0  ;;  %v3795_v50 = vpop.f32.mrb[14].mxu1 }
 0x158   : > { %v3799_v52 = vpop.f32.mrb[15].mxu0  ;;  %v3801_v53 = vpop.f32.mrb[15].mxu1 }
 0x15b   : > { %v3805_v55 = vpop.f32.mrb[16].mxu0  ;;  %v3807_v56 = vpop.f32.mrb[16].mxu1 }
 0x15c   : > { %v3811_v58 = vpop.f32.mrb[17].mxu0  ;;  %v3813_v59 = vpop.f32.mrb[17].mxu1 }
 0x15f   : > { %v3817_v61 = vpop.f32.mrb[18].mxu0  ;;  %v3819_v62 = vpop.f32.mrb[18].mxu1 }
 0x160   : > { %v3823_v0 = vpop.f32.mrb[19].mxu0  ;;  %v3825_v1 = vpop.f32.mrb[19].mxu1 }
 0x163   : > { %v3829_v3 = vpop.f32.mrb[20].mxu0  ;;  %v3831_v4 = vpop.f32.mrb[20].mxu1 }
 0x164   : > { %v3835_v6 = vpop.f32.mrb[21].mxu0  ;;  %v3837_v60 = vpop.f32.mrb[21].mxu1 }
 0x167   : > { %v3841_v57 = vpop.f32.mrb[22].mxu0  ;;  %v3843_v54 = vpop.f32.mrb[22].mxu1 }
 0x168   : > { %v3847_v51 = vpop.f32.mrb[23].mxu0  ;;  %v3849_v48 = vpop.f32.mrb[23].mxu1 }
 0x16b   : > { %v3853_v45 = vpop.f32.mrb[24].mxu0  ;;  %v3855_v42 = vpop.f32.mrb[24].mxu1 }
 0x16c   : > { %4104 = vst [vmem:[#allocation3_spill] sm:$0xff] %v3855_v42  ;;  %v3859_v39 = vpop.f32.mrb[25].mxu0  ;;  %v3861_v36 = vpop.f32.mrb[25].mxu1 }
 0x16d   : > { %4105 = vst [vmem:[#allocation4_spill] sm:$0xff] %v3859_v39  ;;  %4106 = vst [vmem:[#allocation5_spill] sm:$0xff] %v3861_v36 }
 0x16f   : > { %v3865_v33 = vpop.f32.mrb[26].mxu0  ;;  %v3867_v30 = vpop.f32.mrb[26].mxu1 }
 0x170   : > { %4107 = vst [vmem:[#allocation6_spill] sm:$0xff] %v3865_v33  ;;  %4108 = vst [vmem:[#allocation7_spill] sm:$0xff] %v3867_v30  ;;  %v3871_v27 = vpop.f32.mrb[27].mxu0  ;;  %v3873_v24 = vpop.f32.mrb[27].mxu1 }
 0x171   : > { %4109 = vst [vmem:[#allocation8_spill] sm:$0xff] %v3871_v27  ;;  %4110 = vst [vmem:[#allocation9_spill] sm:$0xff] %v3873_v24  ;;  %v4119_v24 = vmax.f32 %v3709_v7, %v3711_v8 }
 0x173   : > { %v3877_v21 = vpop.f32.mrb[28].mxu0  ;;  %v3879_v18 = vpop.f32.mrb[28].mxu1 }
 0x174   : > { %4111 = vst [vmem:[#allocation10_spill] sm:$0xff] %v3877_v21  ;;  %4112 = vst [vmem:[#allocation11_spill] sm:$0xff] %v3879_v18  ;;  %v3885_v15 = vpop.f32.mrb[29].mxu0  ;;  %v3887_v12 = vpop.f32.mrb[29].mxu1 }
 0x175   : > { %4113 = vst [vmem:[#allocation12_spill] sm:$0xff] %v3885_v15  ;;  %4114 = vst [vmem:[#allocation13_spill] sm:$0xff] %v3887_v12  ;;  %v3906_v15 = vld [vmem:[%s4085_s2] ss:$0 sm:$0xff] }
 0x177   : > { %v3891_v9 = vpop.f32.mrb[30].mxu0  ;;  %v3893_v63 = vpop.f32.mrb[30].mxu1 }
 0x178   : > { %4115 = vst [vmem:[#allocation14_spill] sm:$0xff] %v3891_v9  ;;  %4116 = vst [vmem:[#allocation15_spill] sm:$0xff] %v3893_v63  ;;  %v3897_v27 = vpop.f32.mrb[31].mxu0  ;;  %v3899_v30 = vpop.f32.mrb[31].mxu1 }
 0x179   : > { %4117 = vst [vmem:[#allocation16_spill] sm:$0xff] %v3897_v27  ;;  %4118 = vst [vmem:[#allocation17_spill] sm:$0xff] %v3899_v30 }
 0x17b   : > { %v2910_v18 = vpop.f32.mrb[32].mxu0  ;;  %v2966_v21 = vpop.f32.mrb[32].mxu1 }
 0x17c   : > { %v2173_v33 = vmax.f32 %v2910_v18, %v2966_v21  ;;  %v1627_v5 = vpop.f32.mrb[33].mxu0  ;;  %v1981_v12 = vpop.f32.mrb[33].mxu1 }
 0x17d   : > { %v2172_v36 = vmax.f32 %v1627_v5, %v1981_v12 }
 0x17e   : > { %v2205_v63 = vmax.f32 %v4119_v24, %v2173_v33 }
 0x17f   : > { %v2204_v30 = vmax.f32 %v4120_v2, %v2172_v36  ;;  %v2913_v27 = vpop.f32.mrb[34].mxu0  ;;  %v2969_v9 = vpop.f32.mrb[34].mxu1 }
 0x180   : > { %v2244_v18 = vadd.f32 %v3906_v15, %v2205_v63  ;;  %v2175_v21 = vmax.f32 %v2913_v27, %v2969_v9  ;;  %v1637_v39 = vpop.f32.mrb[35].mxu0  ;;  %v1991_v42 = vpop.f32.mrb[35].mxu1  ;;  %v4122_v9 = vmax.f32 %v3727_v16, %v3729_v17 }
 0x181   : > { %v2243_v7 = vadd.f32 %v3906_v15, %v2204_v30  ;;  %v2174_v8 = vmax.f32 %v1637_v39, %v1991_v42  ;;  %v4123_v42 = vmax.f32 %v3733_v19, %v3735_v20 }
 0x182   : > { %v2276_v12 = vmax.f32 %v2244_v18, 0.0  ;;  %v2207_v11 = vmax.f32 %v4121_v10, %v2175_v21  ;;  %v4124_v18 = vmax.f32 %v3739_v22, %v3741_v23 }
 0x183   : > { %v2275_v24 = vmax.f32 %v2243_v7, 0.0  ;;  %v2206_v27 = vmax.f32 %v4122_v9, %v2174_v8  ;;  %v2916_v33 = vpop.f32.mrb[36].mxu0  ;;  %v2972_v36 = vpop.f32.mrb[36].mxu1 }
 0x184   : > { %2308 = vst [vmem:[%s3918_s20 + $0x8] sm:$0xff] %v2276_v12  ;;  %v2246_v63 = vadd.f32 %v3906_v15, %v2207_v11  ;;  %v2177_v2 = vmax.f32 %v2916_v33, %v2972_v36  ;;  %v1647_v5 = vpop.f32.mrb[37].mxu0  ;;  %v2001_v30 = vpop.f32.mrb[37].mxu1  ;;  %v4126_v33 = vmax.f32 %v3751_v28, %v3753_v29 }
 0x185   : > { %2307 = vst [vmem:[%s3918_s20] sm:$0xff] %v2275_v24  ;;  %v2245_v39 = vadd.f32 %v3906_v15, %v2206_v27  ;;  %v2176_v13 = vmax.f32 %v1647_v5, %v2001_v30  ;;  %v4125_v27 = vmax.f32 %v3745_v25, %v3747_v26 }
 0x186   : > { %v2278_v14 = vmax.f32 %v2246_v63, 0.0  ;;  %v2209_v16 = vmax.f32 %v4123_v42, %v2177_v2  ;;  %v4127_v42 = vmax.f32 %v3757_v31, %v3759_v32 }
 0x187   : > { %v2277_v17 = vmax.f32 %v2245_v39, 0.0  ;;  %v2208_v21 = vmax.f32 %v4124_v18, %v2176_v13  ;;  %v2919_v7 = vpop.f32.mrb[38].mxu0  ;;  %v2975_v8 = vpop.f32.mrb[38].mxu1 }
 0x188   : > { %2310 = vst [vmem:[%s3918_s20 + $0x18] sm:$0xff] %v2278_v14  ;;  %v2248_v12 = vadd.f32 %v3906_v15, %v2209_v16  ;;  %v2179_v10 = vmax.f32 %v2919_v7, %v2975_v8  ;;  %v1657_v11 = vpop.f32.mrb[39].mxu0  ;;  %v2011_v24 = vpop.f32.mrb[39].mxu1  ;;  %v4128_v16 = vmax.f32 %v3763_v34, %v3765_v35 }
 0x189   : > { %2309 = vst [vmem:[%s3918_s20 + $0x10] sm:$0xff] %v2277_v17  ;;  %v2247_v9 = vadd.f32 %v3906_v15, %v2208_v21  ;;  %v2178_v19 = vmax.f32 %v1657_v11, %v2011_v24  ;;  %v4129_v24 = vmax.f32 %v3769_v37, %v3771_v38 }
 0x18a   : > { %v2280_v20 = vmax.f32 %v2248_v12, 0.0  ;;  %v2211_v22 = vmax.f32 %v4125_v27, %v2179_v10 }
 0x18b   : > { %v2279_v23 = vmax.f32 %v2247_v9, 0.0  ;;  %v2210_v36 = vmax.f32 %v4126_v33, %v2178_v19  ;;  %v2922_v63 = vpop.f32.mrb[40].mxu0  ;;  %v2978_v2 = vpop.f32.mrb[40].mxu1  ;;  %v4130_v9 = vmax.f32 %v3775_v40, %v3777_v41 }
 0x18c   : > { %2312 = vst [vmem:[%s3918_s20 + $0x28] sm:$0xff] %v2280_v20  ;;  %v2250_v5 = vadd.f32 %v3906_v15, %v2211_v22  ;;  %v2181_v30 = vmax.f32 %v2922_v63, %v2978_v2  ;;  %v1667_v39 = vpop.f32.mrb[41].mxu0  ;;  %v2021_v13 = vpop.f32.mrb[41].mxu1  ;;  %v4131_v2 = vmax.f32 %v3781_v43, %v3783_v44 }
 0x18d   : > { %2311 = vst [vmem:[%s3918_s20 + $0x20] sm:$0xff] %v2279_v23  ;;  %v2249_v14 = vadd.f32 %v3906_v15, %v2210_v36  ;;  %v2180_v25 = vmax.f32 %v1667_v39, %v2021_v13 }
 0x18e   : > { %v2282_v26 = vmax.f32 %v2250_v5, 0.0  ;;  %v2213_v28 = vmax.f32 %v4127_v42, %v2181_v30  ;;  %v4132_v5 = vmax.f32 %v3787_v46, %v3789_v47 }
 0x18f   : > { %v2281_v29 = vmax.f32 %v2249_v14, 0.0  ;;  %v2212_v17 = vmax.f32 %v4128_v16, %v2180_v25  ;;  %v2925_v18 = vpop.f32.mrb[42].mxu0  ;;  %v2981_v21 = vpop.f32.mrb[42].mxu1  ;;  %v4134_v16 = vmax.f32 %v3799_v52, %v3801_v53 }
 0x190   : > { %2314 = vst [vmem:[%s3918_s20 + $0x38] sm:$0xff] %v2282_v26  ;;  %v2252_v7 = vadd.f32 %v3906_v15, %v2213_v28  ;;  %v2183_v8 = vmax.f32 %v2925_v18, %v2981_v21  ;;  %v1677_v12 = vpop.f32.mrb[43].mxu0  ;;  %v2031_v10 = vpop.f32.mrb[43].mxu1 }
 0x191   : > { %2313 = vst [vmem:[%s3918_s20 + $0x30] sm:$0xff] %v2281_v29  ;;  %v2251_v11 = vadd.f32 %v3906_v15, %v2212_v17  ;;  %v2182_v31 = vmax.f32 %v1677_v12, %v2031_v10  ;;  %v4133_v29 = vmax.f32 %v3793_v49, %v3795_v50 }
 0x192   : > { %v2284_v32 = vmax.f32 %v2252_v7, 0.0  ;;  %v2215_v34 = vmax.f32 %v4129_v24, %v2183_v8 }
 0x193   : > { %v2283_v35 = vmax.f32 %v2251_v11, 0.0  ;;  %v2214_v19 = vmax.f32 %v4130_v9, %v2182_v31  ;;  %v2928_v20 = vpop.f32.mrb[44].mxu0  ;;  %v2984_v27 = vpop.f32.mrb[44].mxu1  ;;  %v4135_v31 = vmax.f32 %v3805_v55, %v3807_v56 }
 0x194   : > { %2316 = vst [vmem:[%s3918_s20 + $0x48] sm:$0xff] %v2284_v32  ;;  %v2254_v22 = vadd.f32 %v3906_v15, %v2215_v34  ;;  %v2185_v23 = vmax.f32 %v2928_v20, %v2984_v27  ;;  %v1687_v33 = vpop.f32.mrb[45].mxu0  ;;  %v2041_v36 = vpop.f32.mrb[45].mxu1  ;;  %v4136_v32 = vmax.f32 %v3811_v58, %v3813_v59 }
 0x195   : > { %2315 = vst [vmem:[%s3918_s20 + $0x40] sm:$0xff] %v2283_v35  ;;  %v2253_v63 = vadd.f32 %v3906_v15, %v2214_v19  ;;  %v2184_v37 = vmax.f32 %v1687_v33, %v2041_v36  ;;  %v4138_v33 = vmax.f32 %v3823_v0, %v3825_v1 }
 0x196   : > { %v2286_v38 = vmax.f32 %v2254_v22, 0.0  ;;  %v2217_v40 = vmax.f32 %v4131_v2, %v2185_v23  ;;  %v4137_v23 = vmax.f32 %v3817_v61, %v3819_v62 }
 0x197   : > { %v2285_v41 = vmax.f32 %v2253_v63, 0.0  ;;  %v2216_v30 = vmax.f32 %v4132_v5, %v2184_v37  ;;  %v2931_v39 = vpop.f32.mrb[46].mxu0  ;;  %v2987_v13 = vpop.f32.mrb[46].mxu1 }
 0x198   : > { %2318 = vst [vmem:[%s3918_s20 + $0x58] sm:$0xff] %v2286_v38  ;;  %v2256_v14 = vadd.f32 %v3906_v15, %v2217_v40  ;;  %v2187_v25 = vmax.f32 %v2931_v39, %v2987_v13  ;;  %v1697_v26 = vpop.f32.mrb[47].mxu0  ;;  %v2051_v42 = vpop.f32.mrb[47].mxu1  ;;  %v4140_v39 = vmax.f32 %v3835_v6, %v3837_v60 }
 0x199   : > { %2317 = vst [vmem:[%s3918_s20 + $0x50] sm:$0xff] %v2285_v41  ;;  %v2255_v28 = vadd.f32 %v3906_v15, %v2216_v30  ;;  %v2186_v43 = vmax.f32 %v1697_v26, %v2051_v42  ;;  %v4139_v30 = vmax.f32 %v3829_v3, %v3831_v4 }
 0x19a   : > { %v2288_v44 = vmax.f32 %v2256_v14, 0.0  ;;  %v2219_v46 = vmax.f32 %v4133_v29, %v2187_v25  ;;  %v4141_v29 = vmax.f32 %v3841_v57, %v3843_v54 }
 0x19b   : > { %v2287_v47 = vmax.f32 %v2255_v28, 0.0  ;;  %v2218_v17 = vmax.f32 %v4134_v16, %v2186_v43  ;;  %v2934_v18 = vpop.f32.mrb[48].mxu0  ;;  %v2990_v21 = vpop.f32.mrb[48].mxu1 }
 0x19c   : > { %2320 = vst [vmem:[%s3918_s20 + $0x68] sm:$0xff] %v2288_v44  ;;  %v2258_v7 = vadd.f32 %v3906_v15, %v2219_v46  ;;  %v2189_v8 = vmax.f32 %v2934_v18, %v2990_v21  ;;  %v1707_v12 = vpop.f32.mrb[49].mxu0  ;;  %v2061_v10 = vpop.f32.mrb[49].mxu1  ;;  %v4142_v46 = vmax.f32 %v3847_v51, %v3849_v48 }
 0x19d   : > { %2319 = vst [vmem:[%s3918_s20 + $0x60] sm:$0xff] %v2287_v47  ;;  %v2257_v11 = vadd.f32 %v3906_v15, %v2218_v17  ;;  %v2188_v49 = vmax.f32 %v1707_v12, %v2061_v10  ;;  %v4143_v10 = vld [vmem:[#allocation3_spill] sm:$0xff] }
 0x19e   : > { %v2290_v50 = vmax.f32 %v2258_v7, 0.0  ;;  %v2221_v52 = vmax.f32 %v4135_v31, %v2189_v8 }
 0x19f   : > { %v2289_v53 = vmax.f32 %v2257_v11, 0.0  ;;  %v2220_v24 = vmax.f32 %v4136_v32, %v2188_v49  ;;  %v2937_v34 = vpop.f32.mrb[50].mxu0  ;;  %v2993_v35 = vpop.f32.mrb[50].mxu1  ;;  %v4144_v11 = vmax.f32 %v3853_v45, %v4143_v10  ;;  %v4145_v49 = vld [vmem:[#allocation4_spill] sm:$0xff] }
 0x1a0   : > { %2322 = vst [vmem:[%s3918_s20 + $0x78] sm:$0xff] %v2290_v50  ;;  %v2260_v9 = vadd.f32 %v3906_v15, %v2221_v52  ;;  %v2191_v19 = vmax.f32 %v2937_v34, %v2993_v35  ;;  %v1717_v20 = vpop.f32.mrb[51].mxu0  ;;  %v2071_v27 = vpop.f32.mrb[51].mxu1  ;;  %v4146_v50 = vld [vmem:[#allocation5_spill] sm:$0xff] }
 0x1a1   : > { %2321 = vst [vmem:[%s3918_s20 + $0x70] sm:$0xff] %v2289_v53  ;;  %v2259_v22 = vadd.f32 %v3906_v15, %v2220_v24  ;;  %v2190_v55 = vmax.f32 %v1717_v20, %v2071_v27  ;;  %v4147_v31 = vmax.f32 %v4145_v49, %v4146_v50  ;;  %v4148_v27 = vld [vmem:[#allocation6_spill] sm:$0xff] }
 0x1a2   : > { %v2292_v56 = vmax.f32 %v2260_v9, 0.0  ;;  %v2223_v58 = vmax.f32 %v4137_v23, %v2191_v19 }
 0x1a3   : > { %v2291_v59 = vmax.f32 %v2259_v22, 0.0  ;;  %v2222_v36 = vmax.f32 %v4138_v33, %v2190_v55  ;;  %v2940_v63 = vpop.f32.mrb[52].mxu0  ;;  %v2996_v37 = vpop.f32.mrb[52].mxu1  ;;  %v4149_v22 = vld [vmem:[#allocation7_spill] sm:$0xff] }
 0x1a4   : > { %2324 = vst [vmem:[%s3918_s20 + $0x88] sm:$0xff] %v2292_v56  ;;  %v2262_v38 = vadd.f32 %v3906_v15, %v2223_v58  ;;  %v2193_v2 = vmax.f32 %v2940_v63, %v2996_v37  ;;  %v1727_v40 = vpop.f32.mrb[53].mxu0  ;;  %v2081_v41 = vpop.f32.mrb[53].mxu1  ;;  %v4150_v55 = vmax.f32 %v4148_v27, %v4149_v22  ;;  %v4151_v58 = vld [vmem:[#allocation8_spill] sm:$0xff] }
 0x1a5   : > { %2323 = vst [vmem:[%s3918_s20 + $0x80] sm:$0xff] %v2291_v59  ;;  %v2261_v5 = vadd.f32 %v3906_v15, %v2222_v36  ;;  %v2192_v61 = vmax.f32 %v1727_v40, %v2081_v41  ;;  %v4152_v59 = vld [vmem:[#allocation9_spill] sm:$0xff] }
 0x1a6   : > { %v2294_v62 = vmax.f32 %v2262_v38, 0.0  ;;  %v2225_v0 = vmax.f32 %v4139_v30, %v2193_v2  ;;  %v4153_v33 = vmax.f32 %v4151_v58, %v4152_v59  ;;  %v4154_v30 = vld [vmem:[#allocation10_spill] sm:$0xff] }
 0x1a7   : > { %v2293_v1 = vmax.f32 %v2261_v5, 0.0  ;;  %v2224_v13 = vmax.f32 %v4140_v39, %v2192_v61  ;;  %v2943_v14 = vpop.f32.mrb[54].mxu0  ;;  %v2999_v25 = vpop.f32.mrb[54].mxu1 }
 0x1a8   : > { %2326 = vst [vmem:[%s3918_s20 + $0x98] sm:$0xff] %v2294_v62  ;;  %v2264_v26 = vadd.f32 %v3906_v15, %v2225_v0  ;;  %v2195_v42 = vmax.f32 %v2943_v14, %v2999_v25  ;;  %v1737_v28 = vpop.f32.mrb[55].mxu0  ;;  %v2091_v43 = vpop.f32.mrb[55].mxu1  ;;  %v4155_v0 = vld [vmem:[#allocation11_spill] sm:$0xff]  ;;  %v4157_v14 = vld [vmem:[#allocation12_spill] sm:$0xff]  ;;  %v4158_v25 = vld [vmem:[#allocation13_spill] sm:$0xff] }
 0x1a9   : > { %2325 = vst [vmem:[%s3918_s20 + $0x90] sm:$0xff] %v2293_v1  ;;  %v2263_v44 = vadd.f32 %v3906_v15, %v2224_v13  ;;  %v2194_v3 = vmax.f32 %v1737_v28, %v2091_v43  ;;  %v4156_v1 = vmax.f32 %v4154_v30, %v4155_v0 }
 0x1aa   : > { %v2296_v4 = vmax.f32 %v2264_v26, 0.0  ;;  %v2227_v60 = vmax.f32 %v4141_v29, %v2195_v42  ;;  %v4159_v26 = vmax.f32 %v4157_v14, %v4158_v25 }
 0x1ab   : > { %v2295_v6 = vmax.f32 %v2263_v44, 0.0  ;;  %v2226_v47 = vmax.f32 %v4142_v46, %v2194_v3  ;;  %v2946_v16 = vpop.f32.mrb[56].mxu0  ;;  %v3002_v17 = vpop.f32.mrb[56].mxu1 }
 0x1ac   : > { %2328 = vst [vmem:[%s3918_s20 + $0xa8] sm:$0xff] %v2296_v4  ;;  %v2266_v18 = vadd.f32 %v3906_v15, %v2227_v60  ;;  %v2197_v21 = vmax.f32 %v2946_v16, %v3002_v17  ;;  %v1747_v7 = vpop.f32.mrb[57].mxu0  ;;  %v2101_v8 = vpop.f32.mrb[57].mxu1  ;;  %v4161_v16 = vld [vmem:[#allocation15_spill] sm:$0xff] }
 0x1ad   : > { %2327 = vst [vmem:[%s3918_s20 + $0xa0] sm:$0xff] %v2295_v6  ;;  %v2265_v12 = vadd.f32 %v3906_v15, %v2226_v47  ;;  %v2196_v54 = vmax.f32 %v1747_v7, %v2101_v8  ;;  %v4160_v47 = vld [vmem:[#allocation14_spill] sm:$0xff]  ;;  %v4163_v7 = vld [vmem:[#allocation16_spill] sm:$0xff]  ;;  %v4164_v8 = vld [vmem:[#allocation17_spill] sm:$0xff] }
 0x1ae   : > { %v2298_v57 = vmax.f32 %v2266_v18, 0.0  ;;  %v2229_v48 = vmax.f32 %v4144_v11, %v2197_v21  ;;  %v4162_v17 = vmax.f32 %v4160_v47, %v4161_v16 }
 0x1af   : > { %v2297_v51 = vmax.f32 %v2265_v12, 0.0  ;;  %v2228_v52 = vmax.f32 %v4147_v31, %v2196_v54  ;;  %v2949_v53 = vpop.f32.mrb[58].mxu0  ;;  %v3005_v32 = vpop.f32.mrb[58].mxu1  ;;  %v4165_v12 = vmax.f32 %v4163_v7, %v4164_v8 }
 0x1b0   : > { %2330 = vst [vmem:[%s3918_s20 + $0xb8] sm:$0xff] %v2298_v57  ;;  %v2268_v24 = vadd.f32 %v3906_v15, %v2229_v48  ;;  %v2199_v34 = vmax.f32 %v2949_v53, %v3005_v32  ;;  %v1757_v35 = vpop.f32.mrb[59].mxu0  ;;  %v2111_v9 = vpop.f32.mrb[59].mxu1 }
 0x1b1   : > { %2329 = vst [vmem:[%s3918_s20 + $0xb0] sm:$0xff] %v2297_v51  ;;  %v2267_v19 = vadd.f32 %v3906_v15, %v2228_v52  ;;  %v2198_v45 = vmax.f32 %v1757_v35, %v2111_v9 }
 0x1b2   : > { %v2300_v20 = vmax.f32 %v2268_v24, 0.0  ;;  %v2231_v56 = vmax.f32 %v4150_v55, %v2199_v34 }
 0x1b3   : > { %v2299_v23 = vmax.f32 %v2267_v19, 0.0  ;;  %v2230_v36 = vmax.f32 %v4153_v33, %v2198_v45  ;;  %v2952_v63 = vpop.f32.mrb[60].mxu0  ;;  %v3008_v37 = vpop.f32.mrb[60].mxu1 }
 0x1b4   : > { %2332 = vst [vmem:[%s3918_s20 + $0xc8] sm:$0xff] %v2300_v20  ;;  %v2270_v38 = vadd.f32 %v3906_v15, %v2231_v56  ;;  %v2201_v2 = vmax.f32 %v2952_v63, %v3008_v37  ;;  %v1767_v40 = vpop.f32.mrb[61].mxu0  ;;  %v2121_v41 = vpop.f32.mrb[61].mxu1 }
 0x1b5   : > { %2331 = vst [vmem:[%s3918_s20 + $0xc0] sm:$0xff] %v2299_v23  ;;  %v2269_v5 = vadd.f32 %v3906_v15, %v2230_v36  ;;  %v2200_v61 = vmax.f32 %v1767_v40, %v2121_v41 }
 0x1b6   : > { %v2302_v62 = vmax.f32 %v2270_v38, 0.0  ;;  %v2233_v39 = vmax.f32 %v4156_v1, %v2201_v2 }
 0x1b7   : > { %v2301_v13 = vmax.f32 %v2269_v5, 0.0  ;;  %v2232_v42 = vmax.f32 %v4159_v26, %v2200_v61  ;;  %v2955_v28 = vpop.f32.mrb[62].mxu0  ;;  %v3011_v43 = vpop.f32.mrb[62].mxu1 }
 0x1b8   : > { %2334 = vst [vmem:[%s3918_s20 + $0xd8] sm:$0xff] %v2302_v62  ;;  %v2272_v44 = vadd.f32 %v3906_v15, %v2233_v39  ;;  %v2203_v3 = vmax.f32 %v2955_v28, %v3011_v43  ;;  %v1777_v4 = vpop.f32.mrb[63].mxu0  ;;  %v2131_v29 = vpop.f32.mrb[63].mxu1 }
 0x1b9   : > { %2333 = vst [vmem:[%s3918_s20 + $0xd0] sm:$0xff] %v2301_v13  ;;  %v2271_v60 = vadd.f32 %v3906_v15, %v2232_v42  ;;  %v2202_v6 = vmax.f32 %v1777_v4, %v2131_v29 }
 0x1ba   : > { %v2304_v46 = vmax.f32 %v2272_v44, 0.0  ;;  %v2235_v18 = vmax.f32 %v4162_v17, %v2203_v3 }
 0x1bb   : > { %v2303_v21 = vmax.f32 %v2271_v60, 0.0  ;;  %v2234_v54 = vmax.f32 %v4165_v12, %v2202_v6 }
 0x1bc   : > { %2336 = vst [vmem:[%s3918_s20 + $0xe8] sm:$0xff] %v2304_v46  ;;  %v2274_v57 = vadd.f32 %v3906_v15, %v2235_v18 }
 0x1bd   : > { %2335 = vst [vmem:[%s3918_s20 + $0xe0] sm:$0xff] %v2303_v21  ;;  %v2273_v10 = vadd.f32 %v3906_v15, %v2234_v54 }
 0x1be   : > { %v2306_v11 = vmax.f32 %v2274_v57, 0.0 }
 0x1bf   : > { %v2305_v48 = vmax.f32 %v2273_v10, 0.0 }
 0x1c0   : > { %2338 = vst [vmem:[%s3918_s20 + $0xf8] sm:$0xff] %v2306_v11 }
 0x1c1   : > { %2337 = vst [vmem:[%s3918_s20 + $0xf0] sm:$0xff] %v2305_v48 }
 0x1c2 PF: > { %p10_p9 = scmp.ge.s32.totalorder %s3139_s16, 4   ;;  %s4166_s12 = smov %s3095_s13 }
 0x1c3   : > { %s4167_s13 = smov %s3148_s19  ;;  %s4168_s14 = smov %s3139_s16 }
 0x1c4   :  { %12 = sbr.rel (!%p10_p9) target bundleno = 2 (0x2), region = 108 }

// kernel: net_forward.4
= control target key start
LH: loop header
LB: loop body
LE: loop exit
PB: predicated region body
PF: predicated region fallthrough
CT: control target
= control target key end

     0   :  { %v651_v0 = vmov 0.0|0.0   ;;  %vm41_vm0 = vcmask 179200   ;;  %v652_v30 = vmov 0.0   ;;  %vm54_vm1 = vcmask 1045504   ;;  %s961_s1 = inlined_call_operand.vmem [shape: f32[150,128], index: 1, kind: input, shape index: {}]   ;;  %s962_s0 = inlined_call_operand.vmem [shape: f32[4,32,150], index: 0, kind: input, shape index: {}]   ;;  %s963_s2 = inlined_call_operand.vmem [shape: f32[1,128], index: 2, kind: input, shape index: {}]   ;;  %s964_s3 = inlined_call_operand.vmem [shape: f32[32,128], index: 3, kind: output, shape index: {}]  }
   0x1   :  { %541 = vmatprep.subr.bf16.mxu0 %v651_v0  ;;  %568 = vmatprep.subr.bf16.mxu1 %v651_v0  ;;  %v14_v1 = vld [vmem:[%s961_s1] sm:$0xff]  ;;  %v15_v2 = vld [vmem:[%s961_s1 + $0x8] sm:$0xff]  ;;  %v16_v3 = vld [vmem:[%s961_s1 + $0x10] sm:$0xff] }
   0x2   :  { %v684_v4 = vpack.c.bf16 %v15_v2, %v14_v1  ;;  %v17_v5 = vld [vmem:[%s961_s1 + $0x18] sm:$0xff]  ;;  %v18_v7 = vld [vmem:[%s961_s1 + $0x20] sm:$0xff]  ;;  %v19_v8 = vld [vmem:[%s961_s1 + $0x28] sm:$0xff] }
   0x3   :  { %v691_v6 = vpack.c.bf16 %v17_v5, %v16_v3  ;;  %v34_v9 = vld [vmem:[%s962_s0 + $0x8] sm:$0xff]  ;;  %v709_v11 = vpack.c.bf16 %v19_v8, %v18_v7  ;;  %v20_v12 = vld [vmem:[%s961_s1 + $0x30] sm:$0xff]  ;;  %v21_v13 = vld [vmem:[%s961_s1 + $0x38] sm:$0xff] }
   0x4   :  { %543 = vmatpush1.bf16.msra.mxu0 %v684_v4  ;;  %570 = vmatpush1.bf16.msra.mxu1 %v684_v4  ;;  %v502_v10 = vld [vmem:[%s962_s0 + $0x48] sm:$0xff]  ;;  %v723_v14 = vpack.c.bf16 %v21_v13, %v20_v12  ;;  %v22_v15 = vld [vmem:[%s961_s1 + $0x40] sm:$0xff]  ;;  %v24_v18 = vld [vmem:[%s961_s1 + $0x50] sm:$0xff] }
   0x5   :  { %544 = vmatprep.subr.bf16.mxu0 %v651_v0  ;;  %571 = vmatprep.subr.bf16.mxu1 %v651_v0  ;;  %v23_v16 = vld [vmem:[%s961_s1 + $0x48] sm:$0xff]  ;;  %v25_v19 = vld [vmem:[%s961_s1 + $0x58] sm:$0xff]  ;;  %v26_v21 = vld [vmem:[%s961_s1 + $0x60] sm:$0xff] }
   0x6   :  { %497 = vmatprep.mubr.msk.f32.mxu0 %vm41_vm0, %v34_v9  ;;  %510 = vmatprep.mubr.msk.f32.mxu1 %vm41_vm0, %v502_v10  ;;  %v735_v17 = vpack.c.bf16 %v23_v16, %v22_v15  ;;  %v747_v20 = vpack.c.bf16 %v25_v19, %v24_v18  ;;  %v27_v22 = vld [vmem:[%s961_s1 + $0x68] sm:$0xff]  ;;  %v28_v24 = vld [vmem:[%s961_s1 + $0x70] sm:$0xff]  ;;  %v29_v25 = vld [vmem:[%s961_s1 + $0x78] sm:$0xff] }
   0x7   :  { %v759_v23 = vpack.c.bf16 %v27_v22, %v26_v21  ;;  %v771_v26 = vpack.c.bf16 %v29_v25, %v28_v24  ;;  %v30_v27 = vld [vmem:[%s961_s1 + $0x80] sm:$0xff]  ;;  %v31_v28 = vld [vmem:[%s961_s1 + $0x88] sm:$0xff]  ;;  %v794_v31 = vld [vmem:[%s961_s1 + $0x90] sm:$0x3f] }
   0x8   :  { %546 = vmatpush1.bf16.msra.mxu0 %v691_v6  ;;  %573 = vmatpush1.bf16.msra.mxu1 %v691_v6  ;;  %v783_v29 = vpack.c.bf16 %v31_v28, %v30_v27  ;;  %v33_v32 = vld [vmem:[%s962_s0] sm:$0xff]  ;;  %v36_v34 = vld [vmem:[%s962_s0 + $0x18] sm:$0xff]  ;;  %v35_v36 = vld [vmem:[%s962_s0 + $0x10] sm:$0xff] }
   0x9   :  { %547 = vmatprep.subr.bf16.mxu0 %v651_v0  ;;  %574 = vmatprep.subr.bf16.mxu1 %v651_v0  ;;  %v501_v33 = vld [vmem:[%s962_s0 + $0x40] sm:$0xff]  ;;  %v504_v35 = vld [vmem:[%s962_s0 + $0x58] sm:$0xff]  ;;  %v503_v37 = vld [vmem:[%s962_s0 + $0x50] sm:$0xff] }
   0xa   :  { %v38_v38 = vld [vmem:[%s962_s0 + $0x28] sm:$0xff]  ;;  %v37_v40 = vld [vmem:[%s962_s0 + $0x20] sm:$0xff]  ;;  %v40_v42 = vld [vmem:[%s962_s0 + $0x38] sm:$0xff] }
   0xb   :  { %v506_v39 = vld [vmem:[%s962_s0 + $0x68] sm:$0xff]  ;;  %v505_v41 = vld [vmem:[%s962_s0 + $0x60] sm:$0xff]  ;;  %v508_v43 = vld [vmem:[%s962_s0 + $0x78] sm:$0xff] }
   0xc   :  { %549 = vmatpush1.bf16.msra.mxu0 %v709_v11  ;;  %576 = vmatpush1.bf16.msra.mxu1 %v709_v11  ;;  %v39_v44 = vld [vmem:[%s962_s0 + $0x30] sm:$0xff]  ;;  %v515_v46 = vld [vmem:[%s962_s0 + $0x88] sm:$0xff]  ;;  %v514_v48 = vld [vmem:[%s962_s0 + $0x80] sm:$0xff] }
   0xd   :  { %550 = vmatprep.subr.bf16.mxu0 %v651_v0  ;;  %577 = vmatprep.subr.bf16.mxu1 %v651_v0  ;;  %v507_v45 = vld [vmem:[%s962_s0 + $0x70] sm:$0xff]  ;;  %v528_v47 = vld [vmem:[%s962_s0 + $0xc8] sm:$0xff]  ;;  %v527_v49 = vld [vmem:[%s962_s0 + $0xc0] sm:$0xff] }
   0xe   :  { %v517_v50 = vld [vmem:[%s962_s0 + $0x98] sm:$0xff]  ;;  %v516_v52 = vld [vmem:[%s962_s0 + $0x90] sm:$0xff]  ;;  %v519_v54 = vld [vmem:[%s962_s0 + $0xa8] sm:$0xff] }
   0xf   :  { %v530_v51 = vld [vmem:[%s962_s0 + $0xd8] sm:$0xff]  ;;  %v529_v53 = vld [vmem:[%s962_s0 + $0xd0] sm:$0xff]  ;;  %v532_v55 = vld [vmem:[%s962_s0 + $0xe8] sm:$0xff] }
  0x10   :  { %552 = vmatpush1.bf16.msra.mxu0 %v723_v14  ;;  %579 = vmatpush1.bf16.msra.mxu1 %v723_v14  ;;  %v518_v56 = vld [vmem:[%s962_s0 + $0xa0] sm:$0xff]  ;;  %v521_v58 = vld [vmem:[%s962_s0 + $0xb8] sm:$0xff]  ;;  %v520_v60 = vld [vmem:[%s962_s0 + $0xb0] sm:$0xff] }
  0x11   :  { %553 = vmatprep.subr.bf16.mxu0 %v651_v0  ;;  %580 = vmatprep.subr.bf16.mxu1 %v651_v0  ;;  %v531_v57 = vld [vmem:[%s962_s0 + $0xe0] sm:$0xff]  ;;  %v534_v59 = vld [vmem:[%s962_s0 + $0xf8] sm:$0xff]  ;;  %v533_v61 = vld [vmem:[%s962_s0 + $0xf0] sm:$0xff] }
  0x14   :  { %555 = vmatpush1.bf16.msra.mxu0 %v735_v17  ;;  %582 = vmatpush1.bf16.msra.mxu1 %v735_v17 }
  0x15   :  { %556 = vmatprep.subr.bf16.mxu0 %v651_v0  ;;  %583 = vmatprep.subr.bf16.mxu1 %v651_v0 }
  0x18   :  { %558 = vmatpush1.bf16.msra.mxu0 %v747_v20  ;;  %585 = vmatpush1.bf16.msra.mxu1 %v747_v20 }
  0x19   :  { %559 = vmatprep.subr.bf16.mxu0 %v651_v0  ;;  %586 = vmatprep.subr.bf16.mxu1 %v651_v0 }
  0x1c   :  { %561 = vmatpush1.bf16.msra.mxu0 %v759_v23  ;;  %588 = vmatpush1.bf16.msra.mxu1 %v759_v23 }
  0x1d   :  { %562 = vmatprep.subr.bf16.mxu0 %v651_v0  ;;  %589 = vmatprep.subr.bf16.mxu1 %v651_v0 }
  0x20   :  { %564 = vmatpush1.bf16.msra.mxu0 %v771_v26  ;;  %591 = vmatpush1.bf16.msra.mxu1 %v771_v26 }
  0x21   :  { %565 = vmatprep.subr.bf16.mxu0 %v651_v0  ;;  %592 = vmatprep.subr.bf16.mxu1 %v651_v0 }
  0x24   :  { %567 = vmatpush1.bf16.msra.mxu0 %v783_v29  ;;  %594 = vmatpush1.bf16.msra.mxu1 %v783_v29 }
  0x25   :  { %94 = vmatprep.subr.mxu0 %v652_v30  ;;  %200 = vmatprep.subr.mxu1 %v652_v30 }
  0x28   :  { %496 = vmatpush1.msk.msra.mxu0 %vm54_vm1, %v794_v31  ;;  %509 = vmatpush1.msk.msra.mxu1 %vm54_vm1, %v794_v31 }
  0x29   :  { %123 = vmatmul.mubr.f32.vlgmr.msra.gmra.mrb[0].mxu0 %v33_v32  ;;  %229 = vmatmul.mubr.f32.vlgmr.msra.gmra.mrb[0].mxu1 %v501_v33 }
  0x2a   :  { %595 = vmatprep.subr.bf16.mxu0 %v651_v0  ;;  %622 = vmatprep.subr.bf16.mxu1 %v651_v0 }
  0x2b   :  { %597 = vmatpush1.bf16.msra.mxu0 %v684_v4  ;;  %624 = vmatpush1.bf16.msra.mxu1 %v684_v4 }
  0x2c   :  { %598 = vmatprep.subr.bf16.mxu0 %v651_v0  ;;  %625 = vmatprep.subr.bf16.mxu1 %v651_v0 }
  0x2d   :  { %498 = vmatprep.mubr.msk.f32.mxu0 %vm41_vm0, %v36_v34  ;;  %511 = vmatprep.mubr.msk.f32.mxu1 %vm41_vm0, %v504_v35 }
  0x2e   :  { %128 = vmatmul.mubr.f32.gmra.mrb[2].mxu0 %v35_v36  ;;  %234 = vmatmul.mubr.f32.gmra.mrb[2].mxu1 %v503_v37 }
  0x2f   :  { %600 = vmatpush1.bf16.msra.mxu0 %v691_v6  ;;  %627 = vmatpush1.bf16.msra.mxu1 %v691_v6 }
  0x30   :  { %601 = vmatprep.subr.bf16.mxu0 %v651_v0  ;;  %628 = vmatprep.subr.bf16.mxu1 %v651_v0 }
  0x31   :  { %499 = vmatprep.mubr.msk.f32.mxu0 %vm41_vm0, %v38_v38  ;;  %512 = vmatprep.mubr.msk.f32.mxu1 %vm41_vm0, %v506_v39 }
  0x32   :  { %133 = vmatmul.mubr.f32.gmra.mrb[4].mxu0 %v37_v40  ;;  %239 = vmatmul.mubr.f32.gmra.mrb[4].mxu1 %v505_v41 }
  0x33   :  { %603 = vmatpush1.bf16.msra.mxu0 %v709_v11  ;;  %630 = vmatpush1.bf16.msra.mxu1 %v709_v11 }
  0x34   :  { %604 = vmatprep.subr.bf16.mxu0 %v651_v0  ;;  %631 = vmatprep.subr.bf16.mxu1 %v651_v0 }
  0x35   :  { %500 = vmatprep.mubr.msk.f32.mxu0 %vm41_vm0, %v40_v42  ;;  %513 = vmatprep.mubr.msk.f32.mxu1 %vm41_vm0, %v508_v43 }
  0x36   :  { %138 = vmatmul.mubr.f32.gmra.mrb[6].mxu0 %v39_v44  ;;  %244 = vmatmul.mubr.f32.gmra.mrb[6].mxu1 %v507_v45 }
  0x37   :  { %606 = vmatpush1.bf16.msra.mxu0 %v723_v14  ;;  %633 = vmatpush1.bf16.msra.mxu1 %v723_v14 }
  0x38   :  { %607 = vmatprep.subr.bf16.mxu0 %v651_v0  ;;  %634 = vmatprep.subr.bf16.mxu1 %v651_v0 }
  0x39   :  { %523 = vmatprep.mubr.msk.f32.mxu0 %vm41_vm0, %v515_v46  ;;  %536 = vmatprep.mubr.msk.f32.mxu1 %vm41_vm0, %v528_v47 }
  0x3b   :  { %609 = vmatpush1.bf16.msra.mxu0 %v735_v17  ;;  %636 = vmatpush1.bf16.msra.mxu1 %v735_v17 }
  0x3c   :  { %610 = vmatprep.subr.bf16.mxu0 %v651_v0  ;;  %637 = vmatprep.subr.bf16.mxu1 %v651_v0 }
  0x3f   :  { %612 = vmatpush1.bf16.msra.mxu0 %v747_v20  ;;  %639 = vmatpush1.bf16.msra.mxu1 %v747_v20 }
  0x40   :  { %613 = vmatprep.subr.bf16.mxu0 %v651_v0  ;;  %640 = vmatprep.subr.bf16.mxu1 %v651_v0 }
  0x43   :  { %615 = vmatpush1.bf16.msra.mxu0 %v759_v23  ;;  %642 = vmatpush1.bf16.msra.mxu1 %v759_v23  ;;  %v540_v23 = vld [vmem:[%s963_s2] ss:$0 sm:$0xff] }
  0x44   :  { %616 = vmatprep.subr.bf16.mxu0 %v651_v0  ;;  %643 = vmatprep.subr.bf16.mxu1 %v651_v0 }
  0x47   :  { %618 = vmatpush1.bf16.msra.mxu0 %v771_v26  ;;  %645 = vmatpush1.bf16.msra.mxu1 %v771_v26 }
  0x48   :  { %619 = vmatprep.subr.bf16.mxu0 %v651_v0  ;;  %646 = vmatprep.subr.bf16.mxu1 %v651_v0 }
  0x4b   :  { %621 = vmatpush1.bf16.msra.mxu0 %v783_v29  ;;  %648 = vmatpush1.bf16.msra.mxu1 %v783_v29 }
  0x4c   :  { %306 = vmatprep.subr.mxu0 %v652_v30  ;;  %412 = vmatprep.subr.mxu1 %v652_v30 }
  0x4f   :  { %522 = vmatpush1.msk.msra.mxu0 %vm54_vm1, %v794_v31  ;;  %535 = vmatpush1.msk.msra.mxu1 %vm54_vm1, %v794_v31 }
  0x50   :  { %335 = vmatmul.mubr.f32.vlgmr.msra.gmra.mrb[8].mxu0 %v514_v48  ;;  %441 = vmatmul.mubr.f32.vlgmr.msra.gmra.mrb[8].mxu1 %v527_v49 }
  0x51   :  { %524 = vmatprep.mubr.msk.f32.mxu0 %vm41_vm0, %v517_v50  ;;  %537 = vmatprep.mubr.msk.f32.mxu1 %vm41_vm0, %v530_v51 }
  0x54   :  { %340 = vmatmul.mubr.f32.gmra.mrb[10].mxu0 %v516_v52  ;;  %446 = vmatmul.mubr.f32.gmra.mrb[10].mxu1 %v529_v53 }
  0x55   :  { %525 = vmatprep.mubr.msk.f32.mxu0 %vm41_vm0, %v519_v54  ;;  %538 = vmatprep.mubr.msk.f32.mxu1 %vm41_vm0, %v532_v55 }
  0x58   :  { %345 = vmatmul.mubr.f32.gmra.mrb[12].mxu0 %v518_v56  ;;  %451 = vmatmul.mubr.f32.gmra.mrb[12].mxu1 %v531_v57 }
  0x59   :  { %526 = vmatprep.mubr.msk.f32.mxu0 %vm41_vm0, %v521_v58  ;;  %539 = vmatprep.mubr.msk.f32.mxu1 %vm41_vm0, %v534_v59 }
  0x5c   :  { %350 = vmatmul.mubr.f32.gmra.mrb[14].mxu0 %v520_v60  ;;  %456 = vmatmul.mubr.f32.gmra.mrb[14].mxu1 %v533_v61 }
  0xfc   :  { %v124_v62 = vpop.f32.mrb[0].mxu0  ;;  %v230_v63 = vpop.f32.mrb[0].mxu1 }
  0xfd   :  { %v461_v0 = vmax.f32 %v124_v62, %v230_v63  ;;  %v126_v1 = vpop.f32.mrb[1].mxu0  ;;  %v232_v2 = vpop.f32.mrb[1].mxu1 }
 0x101   :  { %v129_v3 = vpop.f32.mrb[2].mxu0  ;;  %v235_v4 = vpop.f32.mrb[2].mxu1 }
 0x102   :  { %v462_v5 = vmax.f32 %v129_v3, %v235_v4  ;;  %v131_v6 = vpop.f32.mrb[3].mxu0  ;;  %v237_v7 = vpop.f32.mrb[3].mxu1 }
 0x105   :  { %v134_v8 = vpop.f32.mrb[4].mxu0  ;;  %v240_v9 = vpop.f32.mrb[4].mxu1 }
 0x106   :  { %v463_v10 = vmax.f32 %v134_v8, %v240_v9  ;;  %v136_v11 = vpop.f32.mrb[5].mxu0  ;;  %v242_v12 = vpop.f32.mrb[5].mxu1 }
 0x109   :  { %v139_v13 = vpop.f32.mrb[6].mxu0  ;;  %v245_v14 = vpop.f32.mrb[6].mxu1 }
 0x10a   :  { %v464_v15 = vmax.f32 %v139_v13, %v245_v14  ;;  %v141_v16 = vpop.f32.mrb[7].mxu0  ;;  %v247_v17 = vpop.f32.mrb[7].mxu1 }
 0x123   :  { %v336_v18 = vpop.f32.mrb[8].mxu0  ;;  %v442_v19 = vpop.f32.mrb[8].mxu1 }
 0x124   :  { %v465_v20 = vmax.f32 %v336_v18, %v442_v19  ;;  %v338_v21 = vpop.f32.mrb[9].mxu0  ;;  %v444_v22 = vpop.f32.mrb[9].mxu1 }
 0x126   :  { %v469_v24 = vmax.f32 %v461_v0, %v465_v20 }
 0x127   :  { %v341_v25 = vpop.f32.mrb[10].mxu0  ;;  %v447_v26 = vpop.f32.mrb[10].mxu1 }
 0x128   :  { %v480_v27 = vadd.f32 %v540_v23, %v469_v24  ;;  %v466_v28 = vmax.f32 %v341_v25, %v447_v26  ;;  %v343_v29 = vpop.f32.mrb[11].mxu0  ;;  %v449_v30 = vpop.f32.mrb[11].mxu1 }
 0x12a   :  { %v484_v31 = vmax.f32 %v480_v27, 0.0  ;;  %v470_v32 = vmax.f32 %v462_v5, %v466_v28 }
 0x12b   :  { %v346_v33 = vpop.f32.mrb[12].mxu0  ;;  %v452_v34 = vpop.f32.mrb[12].mxu1 }
 0x12c   :  { %488 = vst [vmem:[%s964_s3] sm:$0xff] %v484_v31  ;;  %v481_v35 = vadd.f32 %v540_v23, %v470_v32  ;;  %v467_v36 = vmax.f32 %v346_v33, %v452_v34  ;;  %v348_v37 = vpop.f32.mrb[13].mxu0  ;;  %v454_v38 = vpop.f32.mrb[13].mxu1 }
 0x12e   :  { %v485_v39 = vmax.f32 %v481_v35, 0.0  ;;  %v471_v40 = vmax.f32 %v463_v10, %v467_v36 }
 0x12f   :  { %v351_v41 = vpop.f32.mrb[14].mxu0  ;;  %v457_v42 = vpop.f32.mrb[14].mxu1 }
 0x130   :  { %489 = vst [vmem:[%s964_s3 + $0x8] sm:$0xff] %v485_v39  ;;  %v482_v43 = vadd.f32 %v540_v23, %v471_v40  ;;  %v468_v44 = vmax.f32 %v351_v41, %v457_v42  ;;  %v353_v45 = vpop.f32.mrb[15].mxu0  ;;  %v459_v46 = vpop.f32.mrb[15].mxu1 }
 0x132   :  { %v486_v47 = vmax.f32 %v482_v43, 0.0  ;;  %v472_v48 = vmax.f32 %v464_v15, %v468_v44 }
 0x134   :  { %490 = vst [vmem:[%s964_s3 + $0x10] sm:$0xff] %v486_v47  ;;  %v483_v49 = vadd.f32 %v540_v23, %v472_v48 }
 0x136   :  { %v487_v50 = vmax.f32 %v483_v49, 0.0 }
 0x138   :  { %491 = vst [vmem:[%s964_s3 + $0x18] sm:$0xff] %v487_v50 }

// kernel: net_forward.5
= control target key start
LH: loop header
LB: loop body
LE: loop exit
PB: predicated region body
PF: predicated region fallthrough
CT: control target
= control target key end

     0   :  { %v555_v3 = vmov 0.0|0.0   ;;  %vm556_vm0 = vmmov 0   ;;  %s824_s1 = inlined_call_operand.vmem [shape: f32[256,128], index: 1, kind: input, shape index: {}]   ;;  %s825_s0 = inlined_call_operand.vmem [shape: f32[8,256], index: 0, kind: input, shape index: {}]   ;;  %s826_s3 = inlined_call_operand.vmem [shape: f32[128,128], index: 3, kind: input, shape index: {}]   ;;  %s827_s5 = inlined_call_operand.vmem [shape: f32[128,128], index: 5, kind: input, shape index: {}]   ;;  %s828_s2 = inlined_call_operand.vmem [shape: f32[1,128], index: 2, kind: input, shape index: {}]   ;;  %s829_s4 = inlined_call_operand.vmem [shape: f32[1,128], index: 4, kind: input, shape index: {}]   ;;  %s830_s6 = inlined_call_operand.vmem [shape: f32[1,128], index: 6, kind: input, shape index: {}]   ;;  %s831_s7 = inlined_call_operand.vmem [shape: f32[8,128], index: 7, kind: output, shape index: {}]  }
   0x1   :  { %v44_v0 = vld [vmem:[%s824_s1 + $0x80] sm:$0xff]  ;;  %v45_v1 = vld [vmem:[%s824_s1 + $0x88] sm:$0xff]  ;;  %504 = vmatprep.subr.bf16.mxu1 %v555_v3  ;;  %v46_v6 = vld [vmem:[%s824_s1 + $0x90] sm:$0xff] }
   0x2   :  { %v28_v2 = vld [vmem:[%s824_s1] sm:$0xff]  ;;  %v472_v4 = vpack.c.bf16 %v45_v1, %v44_v0  ;;  %v29_v5 = vld [vmem:[%s824_s1 + $0x8] sm:$0xff]  ;;  %v47_v7 = vld [vmem:[%s824_s1 + $0x98] sm:$0xff] }
   0x3   :  { %v474_v8 = vpack.c.bf16 %v29_v5, %v28_v2  ;;  %v476_v9 = vpack.c.bf16 %v47_v7, %v46_v6  ;;  %v30_v10 = vld [vmem:[%s824_s1 + $0x10] sm:$0xff]  ;;  %v31_v11 = vld [vmem:[%s824_s1 + $0x18] sm:$0xff]  ;;  %v48_v12 = vld [vmem:[%s824_s1 + $0xa0] sm:$0xff] }
   0x4   :  { %473 = vmatprep.subr.bf16.mxu0 %v472_v4  ;;  %v49_v13 = vld [vmem:[%s824_s1 + $0xa8] sm:$0xff]  ;;  %v478_v14 = vpack.c.bf16 %v31_v11, %v30_v10  ;;  %v32_v16 = vld [vmem:[%s824_s1 + $0x20] sm:$0xff]  ;;  %v50_v18 = vld [vmem:[%s824_s1 + $0xb0] sm:$0xff] }
   0x5   :  { %475 = vmatpush3.bf16.msra.mxu0 %v474_v8  ;;  %v480_v15 = vpack.c.bf16 %v49_v13, %v48_v12  ;;  %v33_v17 = vld [vmem:[%s824_s1 + $0x28] sm:$0xff]  ;;  %v51_v19 = vld [vmem:[%s824_s1 + $0xb8] sm:$0xff]  ;;  %v34_v22 = vld [vmem:[%s824_s1 + $0x30] sm:$0xff]  ;;  %v557_v12 = vmov 0.0  }
   0x6   :  { %477 = vmatprep.subr.bf16.mxu0 %v476_v9  ;;  %v482_v20 = vpack.c.bf16 %v33_v17, %v32_v16  ;;  %v484_v21 = vpack.c.bf16 %v51_v19, %v50_v18  ;;  %v35_v23 = vld [vmem:[%s824_s1 + $0x38] sm:$0xff]  ;;  %v52_v24 = vld [vmem:[%s824_s1 + $0xc0] sm:$0xff]  ;;  %v53_v25 = vld [vmem:[%s824_s1 + $0xc8] sm:$0xff]  ;;  %434 = vmatprep.mubr.msk.f32.mxu1 %vm556_vm0, %v557_v12 }
   0x7   :  { %v27_v26 = vld [vmem:[%s825_s0 + $0x8] sm:$0xff]  ;;  %v138_v27 = vld [vmem:[%s826_s3] sm:$0xff]  ;;  %v486_v29 = vpack.c.bf16 %v35_v23, %v34_v22  ;;  %v140_v31 = vld [vmem:[%s826_s3 + $0x10] sm:$0xff]  ;;  %v488_v33 = vpack.c.bf16 %v53_v25, %v52_v24 }
   0x8   :  { %131 = vmatprep.mubr.f32.mxu0 %v27_v26  ;;  %v139_v28 = vld [vmem:[%s826_s3 + $0x8] sm:$0xff]  ;;  %v141_v32 = vld [vmem:[%s826_s3 + $0x18] sm:$0xff]  ;;  %v36_v34 = vld [vmem:[%s824_s1 + $0x40] sm:$0xff] }
   0x9   :  { %479 = vmatpush3.bf16.msra.mxu0 %v478_v14  ;;  %v505_v30 = vpack.c.bf16 %v139_v28, %v138_v27  ;;  %v37_v35 = vld [vmem:[%s824_s1 + $0x48] sm:$0xff]  ;;  %v54_v36 = vld [vmem:[%s824_s1 + $0xd0] sm:$0xff]  ;;  %v55_v37 = vld [vmem:[%s824_s1 + $0xd8] sm:$0xff]  ;;  %v508_v38 = vpack.c.bf16 %v141_v32, %v140_v31 }
   0xa   :  { %481 = vmatprep.subr.bf16.mxu0 %v480_v15  ;;  %v142_v39 = vld [vmem:[%s826_s3 + $0x20] sm:$0xff]  ;;  %v143_v40 = vld [vmem:[%s826_s3 + $0x28] sm:$0xff]  ;;  %v490_v41 = vpack.c.bf16 %v37_v35, %v36_v34  ;;  %v492_v42 = vpack.c.bf16 %v55_v37, %v54_v36  ;;  %v38_v43 = vld [vmem:[%s824_s1 + $0x50] sm:$0xff] }
   0xb   :  { %506 = vmatpush3.bf16.msra.mxu1 %v505_v30  ;;  %v39_v44 = vld [vmem:[%s824_s1 + $0x58] sm:$0xff]  ;;  %v56_v45 = vld [vmem:[%s824_s1 + $0xe0] sm:$0xff]  ;;  %v57_v46 = vld [vmem:[%s824_s1 + $0xe8] sm:$0xff]  ;;  %v511_v47 = vpack.c.bf16 %v143_v40, %v142_v39 }
   0xc   :  { %507 = vmatprep.subr.bf16.mxu1 %v555_v3  ;;  %v144_v48 = vld [vmem:[%s826_s3 + $0x30] sm:$0xff]  ;;  %v145_v49 = vld [vmem:[%s826_s3 + $0x38] sm:$0xff]  ;;  %v494_v50 = vpack.c.bf16 %v39_v44, %v38_v43  ;;  %v496_v51 = vpack.c.bf16 %v57_v46, %v56_v45  ;;  %v40_v52 = vld [vmem:[%s824_s1 + $0x60] sm:$0xff] }
   0xd   :  { %483 = vmatpush3.bf16.msra.mxu0 %v482_v20  ;;  %v41_v53 = vld [vmem:[%s824_s1 + $0x68] sm:$0xff]  ;;  %v58_v54 = vld [vmem:[%s824_s1 + $0xf0] sm:$0xff]  ;;  %v59_v55 = vld [vmem:[%s824_s1 + $0xf8] sm:$0xff]  ;;  %v514_v56 = vpack.c.bf16 %v145_v49, %v144_v48 }
   0xe   :  { %485 = vmatprep.subr.bf16.mxu0 %v484_v21  ;;  %v146_v57 = vld [vmem:[%s826_s3 + $0x40] sm:$0xff]  ;;  %v147_v58 = vld [vmem:[%s826_s3 + $0x48] sm:$0xff]  ;;  %v498_v59 = vpack.c.bf16 %v41_v53, %v40_v52  ;;  %v500_v60 = vpack.c.bf16 %v59_v55, %v58_v54  ;;  %v42_v61 = vld [vmem:[%s824_s1 + $0x70] sm:$0xff] }
   0xf   :  { %509 = vmatpush3.bf16.msra.mxu1 %v508_v38  ;;  %v43_v62 = vld [vmem:[%s824_s1 + $0x78] sm:$0xff]  ;;  %v517_v63 = vpack.c.bf16 %v147_v58, %v146_v57  ;;  %v148_v0 = vld [vmem:[%s826_s3 + $0x50] sm:$0xff]  ;;  %v26_v5 = vld [vmem:[%s825_s0] sm:$0xff] }
  0x10   :  { %510 = vmatprep.subr.bf16.mxu1 %v555_v3  ;;  %v149_v1 = vld [vmem:[%s826_s3 + $0x58] sm:$0xff]  ;;  %v502_v2 = vpack.c.bf16 %v43_v62, %v42_v61  ;;  %v150_v6 = vld [vmem:[%s826_s3 + $0x60] sm:$0xff]  ;;  %v151_v7 = vld [vmem:[%s826_s3 + $0x68] sm:$0xff] }
  0x11   :  { %487 = vmatpush3.bf16.msra.mxu0 %v486_v29  ;;  %v520_v4 = vpack.c.bf16 %v149_v1, %v148_v0  ;;  %v523_v8 = vpack.c.bf16 %v151_v7, %v150_v6  ;;  %v152_v9 = vld [vmem:[%s826_s3 + $0x70] sm:$0xff]  ;;  %v153_v10 = vld [vmem:[%s826_s3 + $0x78] sm:$0xff]  ;;  %v232_v13 = vld [vmem:[%s827_s5] sm:$0xff] }
  0x12   :  { %489 = vmatprep.subr.bf16.mxu0 %v488_v33  ;;  %v526_v11 = vpack.c.bf16 %v153_v10, %v152_v9  ;;  %v233_v14 = vld [vmem:[%s827_s5 + $0x8] sm:$0xff]  ;;  %v234_v15 = vld [vmem:[%s827_s5 + $0x10] sm:$0xff]  ;;  %v235_v17 = vld [vmem:[%s827_s5 + $0x18] sm:$0xff] }
  0x13   :  { %512 = vmatpush3.bf16.msra.mxu1 %v511_v47  ;;  %v529_v16 = vpack.c.bf16 %v233_v14, %v232_v13  ;;  %v532_v18 = vpack.c.bf16 %v235_v17, %v234_v15  ;;  %v236_v19 = vld [vmem:[%s827_s5 + $0x20] sm:$0xff]  ;;  %v237_v20 = vld [vmem:[%s827_s5 + $0x28] sm:$0xff]  ;;  %v238_v22 = vld [vmem:[%s827_s5 + $0x30] sm:$0xff] }
  0x14   :  { %513 = vmatprep.subr.bf16.mxu1 %v555_v3  ;;  %v535_v21 = vpack.c.bf16 %v237_v20, %v236_v19  ;;  %v239_v23 = vld [vmem:[%s827_s5 + $0x38] sm:$0xff]  ;;  %v240_v25 = vld [vmem:[%s827_s5 + $0x40] sm:$0xff]  ;;  %v241_v26 = vld [vmem:[%s827_s5 + $0x48] sm:$0xff] }
  0x15   :  { %491 = vmatpush3.bf16.msra.mxu0 %v490_v41  ;;  %v538_v24 = vpack.c.bf16 %v239_v23, %v238_v22  ;;  %v541_v27 = vpack.c.bf16 %v241_v26, %v240_v25  ;;  %v242_v28 = vld [vmem:[%s827_s5 + $0x50] sm:$0xff]  ;;  %v243_v29 = vld [vmem:[%s827_s5 + $0x58] sm:$0xff]  ;;  %v244_v31 = vld [vmem:[%s827_s5 + $0x60] sm:$0xff] }
  0x16   :  { %493 = vmatprep.subr.bf16.mxu0 %v492_v42  ;;  %v544_v30 = vpack.c.bf16 %v243_v29, %v242_v28  ;;  %v245_v32 = vld [vmem:[%s827_s5 + $0x68] sm:$0xff]  ;;  %v330_v35 = vld [vmem:[%s828_s2] ss:$0 sm:$0xff]  ;;  %v246_v40 = vld [vmem:[%s827_s5 + $0x70] sm:$0xff] }
  0x17   :  { %515 = vmatpush3.bf16.msra.mxu1 %v514_v56  ;;  %v547_v33 = vpack.c.bf16 %v245_v32, %v244_v31  ;;  %v247_v41 = vld [vmem:[%s827_s5 + $0x78] sm:$0xff]  ;;  %v332_v47 = vld [vmem:[%s830_s6] ss:$0 sm:$0xff] }
  0x18   :  { %516 = vmatprep.subr.bf16.mxu1 %v555_v3  ;;  %v550_v42 = vpack.c.bf16 %v247_v41, %v246_v40 }
  0x19   :  { %495 = vmatpush3.bf16.msra.mxu0 %v494_v50 }
  0x1a   :  { %497 = vmatprep.subr.bf16.mxu0 %v496_v51 }
  0x1b   :  { %518 = vmatpush3.bf16.msra.mxu1 %v517_v63 }
  0x1c   :  { %519 = vmatprep.subr.bf16.mxu1 %v555_v3 }
  0x1d   :  { %499 = vmatpush3.bf16.msra.mxu0 %v498_v59 }
  0x1e   :  { %501 = vmatprep.subr.bf16.mxu0 %v500_v60 }
  0x1f   :  { %521 = vmatpush3.bf16.msra.mxu1 %v520_v4 }
  0x20   :  { %522 = vmatprep.subr.bf16.mxu1 %v555_v3 }
  0x21   :  { %503 = vmatpush3.bf16.msra.mxu0 %v502_v2 }
  0x22   :  { %528 = vmatprep.subr.bf16.mxu0 %v555_v3 }
  0x23   :  { %524 = vmatpush3.bf16.msra.mxu1 %v523_v8 }
  0x24   :  { %132 = vmatmul.mubr.f32.vlgmr.msra.gmra.mrb[0].mxu0 %v26_v5  ;;  %525 = vmatprep.subr.bf16.mxu1 %v555_v3 }
  0x25   :  { %469 = vmatprep.mubr.msk.f32.mxu0 %vm556_vm0, %v557_v12  ;;  %530 = vmatpush3.bf16.msra.mxu0 %v529_v16 }
  0x26   :  { %531 = vmatprep.subr.bf16.mxu0 %v555_v3 }
  0x27   :  { %527 = vmatpush3.bf16.msra.mxu1 %v526_v11 }
  0x29   :  { %533 = vmatpush3.bf16.msra.mxu0 %v532_v18 }
  0x2a   :  { %534 = vmatprep.subr.bf16.mxu0 %v555_v3 }
  0x2d   :  { %536 = vmatpush3.bf16.msra.mxu0 %v535_v21 }
  0x2e   :  { %537 = vmatprep.subr.bf16.mxu0 %v555_v3 }
  0x31   :  { %539 = vmatpush3.bf16.msra.mxu0 %v538_v24 }
  0x32   :  { %540 = vmatprep.subr.bf16.mxu0 %v555_v3 }
  0x35   :  { %542 = vmatpush3.bf16.msra.mxu0 %v541_v27 }
  0x36   :  { %543 = vmatprep.subr.bf16.mxu0 %v555_v3 }
  0x39   :  { %545 = vmatpush3.bf16.msra.mxu0 %v544_v30 }
  0x3a   :  { %546 = vmatprep.subr.bf16.mxu0 %v555_v3 }
  0x3d   :  { %548 = vmatpush3.bf16.msra.mxu0 %v547_v33 }
  0x3e   :  { %549 = vmatprep.subr.bf16.mxu0 %v555_v3  ;;  %v331_v3 = vld [vmem:[%s829_s4] ss:$0 sm:$0xff] }
  0x41   :  { %551 = vmatpush3.bf16.msra.mxu0 %v550_v42 }
  0xf7   :  { %v365_v34 = vpop.f32.mrb[0].mxu0 }
  0xf8   :  { %v366_v36 = vpop.f32.mrb[1].mxu0 }
  0xf9   :  { %v367_v37 = vadd.f32 %v366_v36, %v365_v34 }
  0xfb   :  { %v134_v38 = vadd.f32 %v367_v37, %v330_v35 }
  0xfd   :  { %v137_v39 = vmax.f32 %v134_v38, 0.0 }
  0xff   :  { %435 = vmatmul.mubr.f32.vlgmr.msra.gmra.mrb[0].mxu1 %v137_v39 }
 0x1d2   :  { %v227_v43 = vpop.f32.mrb[0].mxu1 }
 0x1d3   :  { %v228_v44 = vadd.f32 %v331_v3, %v227_v43  ;;  %v436_v45 = vpop.f32.mrb[1].mxu1 }
 0x1d5   :  { %v231_v46 = vmax.f32 %v228_v44, 0.0 }
 0x1d7   :  { %470 = vmatmul.mubr.f32.vlgmr.msra.gmra.mrb[2].mxu0 %v231_v46 }
 0x2aa   :  { %v321_v48 = vpop.f32.mrb[2].mxu0 }
 0x2ab   :  { %v322_v49 = vadd.f32 %v332_v47, %v321_v48  ;;  %v471_v50 = vpop.f32.mrb[3].mxu0 }
 0x2ad   :  { %325 = vst [vmem:[%s831_s7] sm:$0xff] %v322_v49 }

</bundles_post_ra>
